<compile_context>
chip_gen: v5e
topology: v5e:2x2
jax: 0.10.0
libtpu: 0.0.40
codegen_flags: <defaults>
</compile_context>

<pallas_src>
import functools

import numpy as np
import jax
import jax.numpy as jnp
from jax import lax
from jax.experimental import pallas as pl
from jax.experimental.pallas import tpu as pltpu


# ----------------------------- Pallas kernel ------------------------------ #
def _classifier_kernel(xp_ref, wrow_ref, wb_ref, bb_ref, wh_ref, bh_ref,
                       out_ref, pooled_ref, *, sb):
    """One grid step == TB samples.

    xp_ref    : (TB, H, Kpad)      bf16  row-im2col'd padded input + ones bias col
    wrow_ref  : (Kpad, W*Cout)     bf16  banded conv weight, conv bias folded in
    wb_ref    : (W*Cout, Bpad)     bf16  bottleneck weight, W-tiled, 1/(H*W) folded
    bb_ref    : (1, Bpad)          f32
    wh_ref    : (Bpad, ncls_pad)   bf16  selected head weight (padded)
    bh_ref    : (1, ncls_pad)      f32
    out_ref   : (TB, ncls_pad)     f32
    pooled_ref: (TB, W*Cout)       f32   VMEM scratch (pooled features, pre W-sum)
    """
    tb, h, kpad = xp_ref.shape
    wcout = wrow_ref.shape[-1]
    n_chunks = tb // sb

    # Conv + ReLU + partial pooling, chunked over sub-batches of `sb` samples
    # (sb*h = 128 matmul rows for H=16) so the f32 intermediate stays bounded.
    def chunk(c, carry):
        s0 = pl.multiple_of(c * sb, sb)
        lhs = xp_ref[pl.ds(s0, sb)].reshape(sb * h, kpad)          # bf16 (sb*h, Kpad)
        conv = jnp.dot(lhs, wrow_ref[...],
                       preferred_element_type=jnp.float32)         # (sb*h, W*Cout) f32
        conv = jnp.maximum(conv, 0.0)                              # bias already in wrow
        # AdaptiveAvgPool2d((1,1)): sum over H here; W-sum and 1/(H*W) folded into wb.
        pooled_ref[pl.ds(s0, sb), :] = jnp.sum(
            conv.reshape(sb, h, wcout), axis=1)                    # (sb, W*Cout) f32
        return carry

    lax.fori_loop(0, n_chunks, chunk, 0)

    pooled = pooled_ref[...]                                       # (TB, W*Cout) f32

    # Bottleneck Linear + ReLU (M = TB).
    bott = jnp.dot(pooled.astype(wb_ref.dtype), wb_ref[...],
                   preferred_element_type=jnp.float32)
    bott = jnp.maximum(bott + bb_ref[...], 0.0)                    # (TB, Bpad) f32

    # Selected head Linear.
    logits = jnp.dot(bott.astype(wh_ref.dtype), wh_ref[...],
                     preferred_element_type=jnp.float32)
    out_ref[...] = (logits + bh_ref[...]).astype(out_ref.dtype)


# ------------------------------- wrapper ----------------------------------- #
def multi_output_classifier_forward(x_nchw, params, dataset_name, *, tb=32):
    """Forward pass matching MultiOutputClassifier.forward(x, dataset_name)."""
    N, Cin, H, W = x_nchw.shape
    KH, KW = 3, 3
    wconv = params["wconv"]                      # (3, 3, Cin, Cout)
    Cout = wconv.shape[-1]
    wb = params["wb"]
    Bdim = wb.shape[-1]
    head = params["heads"][dataset_name]
    wh, bh = head["w"], head["b"]
    ncls = wh.shape[-1]

    def rup(a, m):
        return ((a + m - 1) // m) * m

    # ---- tiling: SB samples per in-kernel chunk; TB capped so grid >= 2 when possible
    SB = 8                                                     # 8 * H(=16) = 128 rows/matmul
    tb_eff = min(max(tb, SB), max(SB, rup(pl.cdiv(N, 2), SB)))
    tb_eff = max(SB, (tb_eff // SB) * SB)
    n_pad = rup(N, tb_eff)

    WCout = W * Cout
    Kraw = KH * (W + 2) * Cin                                  # 3 row-taps concatenated on K
    Kpad = rup(Kraw + 1, 128)                                  # +1 ones-column (conv bias)
    Bpad = rup(Bdim, 128)
    ncls_pad = rup(ncls, 128)

    # ---- input: NCHW -> NHWC, SAME zero-pad, row-im2col over H (taps concat on K) ----
    x_nhwc = jnp.transpose(x_nchw, (0, 2, 3, 1)).astype(jnp.float32)
    xpad = jnp.pad(x_nhwc, ((0, 0), (1, 1), (1, 1), (0, 0)))   # (N, H+2, W+2, Cin)
    xflat = xpad.reshape(N, H + 2, (W + 2) * Cin)
    taps = jnp.concatenate([xflat[:, dh:dh + H, :] for dh in range(KH)],
                           axis=-1)                            # (N, H, Kraw)
    xp = jnp.concatenate(
        [taps,
         jnp.ones((N, H, 1), jnp.float32),                     # bias-as-weight column
         jnp.zeros((N, H, Kpad - Kraw - 1), jnp.float32)],
        axis=-1)                                               # (N, H, Kpad)
    xp = jnp.pad(xp, ((0, n_pad - N), (0, 0), (0, 0))).astype(jnp.bfloat16)

    # ---- single banded (block-Toeplitz) conv weight slab, bias folded in ----
    #   wrow[dh*(W+2)*Cin + (w+dw)*Cin + ci, w*Cout + co] = wconv[dh, dw, ci, co]
    wc_np = np.asarray(wconv, np.float32)
    bconv_np = np.asarray(params["bconv"], np.float32)
    wrow_np = np.zeros((Kpad, WCout), np.float32)
    for dh in range(KH):
        for dw in range(KW):
            for w in range(W):
                k0 = dh * (W + 2) * Cin + (w + dw) * Cin
                wrow_np[k0:k0 + Cin, w * Cout:(w + 1) * Cout] = wc_np[dh, dw]
    wrow_np[Kraw, :] = np.tile(bconv_np, W)                    # bias row (ones column)
    wrow = jnp.asarray(wrow_np, jnp.bfloat16)

    # ---- bottleneck: W-tiled, 1/(H*W) pool scale folded in, Bdim padded to 128 ----
    wb_np = np.asarray(wb, np.float32)
    wb_t_np = np.zeros((WCout, Bpad), np.float32)
    wb_t_np[:, :Bdim] = np.tile(wb_np, (W, 1)) / float(H * W)
    wb_t = jnp.asarray(wb_t_np, jnp.bfloat16)
    bb_p = jnp.zeros((1, Bpad), jnp.float32).at[0, :Bdim].set(
        params["bb"].astype(jnp.float32))

    # ---- head: pad classes to 128 lanes, pad K (Bdim) rows with zeros ----
    wh_p = jnp.zeros((Bpad, ncls_pad), jnp.bfloat16).at[:Bdim, :ncls].set(
        wh.astype(jnp.bfloat16))
    bh_p = jnp.zeros((1, ncls_pad), jnp.float32).at[0, :ncls].set(
        bh.astype(jnp.float32))

    def const(shape):
        return pl.BlockSpec(shape, lambda i: (0,) * len(shape))

    grid = (n_pad // tb_eff,)
    out = pl.pallas_call(
        functools.partial(_classifier_kernel, sb=SB),
        out_shape=jax.ShapeDtypeStruct((n_pad, ncls_pad), jnp.float32),
        grid=grid,
        in_specs=[
            pl.BlockSpec((tb_eff, H, Kpad), lambda i: (i, 0, 0)),   # input block
            const((Kpad, WCout)),                                   # conv weight slab
            const((WCout, Bpad)),                                   # bottleneck W
            const((1, Bpad)),                                       # bottleneck b
            const((Bpad, ncls_pad)),                                # head W
            const((1, ncls_pad)),                                   # head b
        ],
        out_specs=pl.BlockSpec((tb_eff, ncls_pad), lambda i: (i, 0)),
        scratch_shapes=[pltpu.VMEM((tb_eff, WCout), jnp.float32)],  # pooled accumulator
        compiler_params=pltpu.CompilerParams(
            dimension_semantics=("parallel",),
            vmem_limit_bytes=32 * 1024 * 1024),
    )(xp, wrow, wb_t, bb_p, wh_p, bh_p)

    return out[:N, :ncls]


# ----------------------------- reference (pure JAX) ------------------------ #
def _reference_forward(x_nchw, params, dataset_name):
    wconv = params["wconv"]        # (3, 3, Cin, Cout)
    f = jax.lax.conv_general_dilated(
        x_nchw.astype(jnp.float32), jnp.transpose(wconv, (3, 2, 0, 1)),
        window_strides=(1, 1), padding="SAME",
        dimension_numbers=("NCHW", "OIHW", "NCHW"))
    f = f + params["bconv"].reshape(1, -1, 1, 1)
    f = jnp.maximum(f, 0.0)
    f = jnp.mean(f, axis=(2, 3))                               # pool + flatten
    f = jnp.maximum(f @ params["wb"] + params["bb"], 0.0)      # bottleneck
    head = params["heads"][dataset_name]
    return f @ head["w"] + head["b"]


# ----------------------------- parameter setup ----------------------------- #
def init_params(key, cin=4, cout=32, bdim=32, heads_spec=None):
    if heads_spec is None:
        heads_spec = {"dataset_a": 10, "dataset_b": 7}
    keys = jax.random.split(key, 6 + 2 * len(heads_spec))
    params = {
        "wconv": 0.1 * jax.random.normal(keys[0], (3, 3, cin, cout), jnp.float32),
        "bconv": 0.1 * jax.random.normal(keys[1], (cout,), jnp.float32),
        "wb": 0.1 * jax.random.normal(keys[2], (cout, bdim), jnp.float32),
        "bb": 0.1 * jax.random.normal(keys[3], (bdim,), jnp.float32),
        "heads": {},
    }
    i = 4
    for name, ncls in heads_spec.items():
        params["heads"][name] = {
            "w": 0.1 * jax.random.normal(keys[i], (bdim, ncls), jnp.float32),
            "b": 0.1 * jax.random.normal(keys[i + 1], (ncls,), jnp.float32),
        }
        i += 2
    return params


if __name__ == "__main__":
    key = jax.random.PRNGKey(0)
    kx, kp = jax.random.split(key)
    x = jax.random.normal(kx, (2, 4, 16, 16), jnp.float32)     # NCHW, like PyTorch
    params = init_params(kp)

    for name, ncls in (("dataset_a", 10), ("dataset_b", 7)):
        out = multi_output_classifier_forward(x, params, name)
        out = jax.block_until_ready(out)
        ref = _reference_forward(x, params, name)
        assert out.shape == ref.shape == (2, ncls)
        # bf16 matmul operands -> looser tolerance than pure-f32.
        assert jnp.allclose(out, ref, atol=3e-2, rtol=3e-2), f"mismatch vs reference ({name})"

    print("KERNEL_OK")
</pallas_src>

<mosaic_0001>
module attributes {stable_mosaic.version = 11 : i64} {
  func.func @_classifier_kernel(%arg0: i32, %arg1: memref<8x16x256xbf16, #tpu.memory_space<vmem>>, %arg2: memref<256x512xbf16, #tpu.memory_space<vmem>>, %arg3: memref<512x128xbf16, #tpu.memory_space<vmem>>, %arg4: memref<1x128xf32, #tpu.memory_space<vmem>>, %arg5: memref<128x128xbf16, #tpu.memory_space<vmem>>, %arg6: memref<1x128xf32, #tpu.memory_space<vmem>>, %arg7: memref<8x128xf32, #tpu.memory_space<vmem>>, %arg8: memref<8x512xf32, #tpu.memory_space<vmem>>) attributes {dimension_semantics = [#tpu.dimension_semantics<parallel>], iteration_bounds = array<i64: 1>, scalar_prefetch = 0 : i64, scratch_operands = 1 : i64, tpu.core_type = #tpu.core_type<tc>, window_params = [{transform_indices = @transform_0, window_bounds = array<i64: 8, 16, 256>}, {pipeline_mode = #tpu.pipeline_mode<synchronous>, transform_indices = @transform_1, window_bounds = array<i64: 256, 512>}, {pipeline_mode = #tpu.pipeline_mode<synchronous>, transform_indices = @transform_2, window_bounds = array<i64: 512, 128>}, {pipeline_mode = #tpu.pipeline_mode<synchronous>, transform_indices = @transform_3, window_bounds = array<i64: 1, 128>}, {pipeline_mode = #tpu.pipeline_mode<synchronous>, transform_indices = @transform_4, window_bounds = array<i64: 128, 128>}, {pipeline_mode = #tpu.pipeline_mode<synchronous>, transform_indices = @transform_5, window_bounds = array<i64: 1, 128>}, {transform_indices = @transform_6, window_bounds = array<i64: 8, 128>}]} {
    %c0_i32 = arith.constant 0 : i32
    %c8_i32 = arith.constant 8 : i32
    %0 = arith.muli %c0_i32, %c8_i32 : i32
    %1 = tpu.assume_multiple %0, 8 : i32
    %2 = arith.index_cast %1 : i32 to index
    %c0 = arith.constant 0 : index
    %c0_0 = arith.constant 0 : index
    %3 = vector.load %arg1[%2, %c0, %c0_0] : memref<8x16x256xbf16, #tpu.memory_space<vmem>>, vector<8x16x256xbf16>
    %4 = vector.shape_cast %3 : vector<8x16x256xbf16> to vector<128x256xbf16>
    %c0_1 = arith.constant 0 : index
    %c0_2 = arith.constant 0 : index
    %5 = vector.load %arg2[%c0_1, %c0_2] : memref<256x512xbf16, #tpu.memory_space<vmem>>, vector<256x512xbf16>
    %cst = arith.constant dense<0.000000e+00> : vector<128x512xf32>
    %6 = tpu.matmul %4, %5, %cst {dimension_numbers = #tpu.dot_dimension_numbers<[1], [0], [0], [1], [0, 0, 1, 1], [], []>} : vector<128x256xbf16>, vector<256x512xbf16>, vector<128x512xf32> -> vector<128x512xf32>
    %cst_3 = arith.constant 0.000000e+00 : f32
    %7 = vector.broadcast %cst_3 : f32 to vector<128x512xf32>
    %8 = arith.maximumf %6, %7 : vector<128x512xf32>
    %9 = vector.shape_cast %8 : vector<128x512xf32> to vector<8x16x512xf32>
    %cst_4 = arith.constant dense<0.000000e+00> : vector<8x512xf32>
    %10 = vector.multi_reduction <add>, %9, %cst_4 [1] : vector<8x16x512xf32> to vector<8x512xf32>
    %11 = arith.index_cast %1 : i32 to index
    %c0_5 = arith.constant 0 : index
    %12 = vector.load %arg8[%11, %c0_5] : memref<8x512xf32, #tpu.memory_space<vmem>>, vector<8x512xf32>
    tpu.vector_store %arg8[%11, %c0_5], %10 {strides = array<i32>} : memref<8x512xf32, #tpu.memory_space<vmem>>, vector<8x512xf32>,
    %c1_i32 = arith.constant 1 : i32
    %c0_6 = arith.constant 0 : index
    %c0_7 = arith.constant 0 : index
    %13 = vector.load %arg8[%c0_6, %c0_7] : memref<8x512xf32, #tpu.memory_space<vmem>>, vector<8x512xf32>
    %14 = arith.truncf %13 : vector<8x512xf32> to vector<8x512xbf16>
    %c0_8 = arith.constant 0 : index
    %c0_9 = arith.constant 0 : index
    %15 = vector.load %arg3[%c0_8, %c0_9] : memref<512x128xbf16, #tpu.memory_space<vmem>>, vector<512x128xbf16>
    %cst_10 = arith.constant dense<0.000000e+00> : vector<8x128xf32>
    %16 = tpu.matmul %14, %15, %cst_10 {dimension_numbers = #tpu.dot_dimension_numbers<[1], [0], [0], [1], [0, 0, 1, 1], [], []>} : vector<8x512xbf16>, vector<512x128xbf16>, vector<8x128xf32> -> vector<8x128xf32>
    %c0_11 = arith.constant 0 : index
    %c0_12 = arith.constant 0 : index
    %17 = vector.load %arg4[%c0_11, %c0_12] : memref<1x128xf32, #tpu.memory_space<vmem>>, vector<1x128xf32>
    %18 = vector.broadcast %17 : vector<1x128xf32> to vector<8x128xf32>
    %19 = arith.addf %16, %18 : vector<8x128xf32>
    %cst_13 = arith.constant 0.000000e+00 : f32
    %20 = vector.broadcast %cst_13 : f32 to vector<8x128xf32>
    %21 = arith.maximumf %19, %20 : vector<8x128xf32>
    %22 = arith.truncf %21 : vector<8x128xf32> to vector<8x128xbf16>
    %c0_14 = arith.constant 0 : index
    %c0_15 = arith.constant 0 : index
    %23 = vector.load %arg5[%c0_14, %c0_15] : memref<128x128xbf16, #tpu.memory_space<vmem>>, vector<128x128xbf16>
    %cst_16 = arith.constant dense<0.000000e+00> : vector<8x128xf32>
    %24 = tpu.matmul %22, %23, %cst_16 {dimension_numbers = #tpu.dot_dimension_numbers<[1], [0], [0], [1], [0, 0, 1, 1], [], []>} : vector<8x128xbf16>, vector<128x128xbf16>, vector<8x128xf32> -> vector<8x128xf32>
    %c0_17 = arith.constant 0 : index
    %c0_18 = arith.constant 0 : index
    %25 = vector.load %arg6[%c0_17, %c0_18] : memref<1x128xf32, #tpu.memory_space<vmem>>, vector<1x128xf32>
    %26 = vector.broadcast %25 : vector<1x128xf32> to vector<8x128xf32>
    %27 = arith.addf %24, %26 : vector<8x128xf32>
    %c0_19 = arith.constant 0 : index
    %c0_20 = arith.constant 0 : index
    %28 = vector.load %arg7[%c0_19, %c0_20] : memref<8x128xf32, #tpu.memory_space<vmem>>, vector<8x128xf32>
    tpu.vector_store %arg7[%c0_19, %c0_20], %27 {strides = array<i32>} : memref<8x128xf32, #tpu.memory_space<vmem>>, vector<8x128xf32>,
    return
  }
  func.func @transform_0(%arg0: i32) -> (i32, i32, i32) {
    %c0_i32 = arith.constant 0 : i32
    %c0_i32_0 = arith.constant 0 : i32
    %c0_i32_1 = arith.constant 0 : i32
    return %arg0, %c0_i32, %c0_i32_0 : i32, i32, i32
  }
  func.func @transform_1(%arg0: i32) -> (i32, i32) {
    %c0_i32 = arith.constant 0 : i32
    %c0_i32_0 = arith.constant 0 : i32
    %c0_i32_1 = arith.constant 0 : i32
    return %c0_i32, %c0_i32_0 : i32, i32
  }
  func.func @transform_2(%arg0: i32) -> (i32, i32) {
    %c0_i32 = arith.constant 0 : i32
    %c0_i32_0 = arith.constant 0 : i32
    %c0_i32_1 = arith.constant 0 : i32
    return %c0_i32, %c0_i32_0 : i32, i32
  }
  func.func @transform_3(%arg0: i32) -> (i32, i32) {
    %c0_i32 = arith.constant 0 : i32
    %c0_i32_0 = arith.constant 0 : i32
    %c0_i32_1 = arith.constant 0 : i32
    return %c0_i32, %c0_i32_0 : i32, i32
  }
  func.func @transform_4(%arg0: i32) -> (i32, i32) {
    %c0_i32 = arith.constant 0 : i32
    %c0_i32_0 = arith.constant 0 : i32
    %c0_i32_1 = arith.constant 0 : i32
    return %c0_i32, %c0_i32_0 : i32, i32
  }
  func.func @transform_5(%arg0: i32) -> (i32, i32) {
    %c0_i32 = arith.constant 0 : i32
    %c0_i32_0 = arith.constant 0 : i32
    %c0_i32_1 = arith.constant 0 : i32
    return %c0_i32, %c0_i32_0 : i32, i32
  }
  func.func @transform_6(%arg0: i32) -> (i32, i32) {
    %c0_i32 = arith.constant 0 : i32
    %c0_i32_0 = arith.constant 0 : i32
    return %arg0, %c0_i32 : i32, i32
  }
}

</mosaic_0001>

<bundles_post_ra>
// kernel: tpu_custom_call.1
= control target key start
LH: loop header
LB: loop body
LE: loop exit
PB: predicated region body
PF: predicated region fallthrough
CT: control target
= control target key end

     0   :  { %11 = vsyncpa [#allocation4], 0  ;;  %s2710_s0 = inlined_call_operand.hbm [shape: bf16[8,16,256], index: 0, kind: input, shape index: {}]   ;;  %s2711_s1 = inlined_call_operand.hbm [shape: bf16[256,512], index: 1, kind: input, shape index: {}]   ;;  %s2712_s2 = inlined_call_operand.hbm [shape: bf16[512,128], index: 2, kind: input, shape index: {}]   ;;  %s2713_s3 = inlined_call_operand.vmem [shape: f32[1,128], index: 3, kind: input, shape index: {}]   ;;  %s2714_s4 = inlined_call_operand.hbm [shape: bf16[128,128], index: 4, kind: input, shape index: {}]   ;;  %s2715_s5 = inlined_call_operand.vmem [shape: f32[1,128], index: 5, kind: input, shape index: {}]   ;;  %s2716_s6 = inlined_call_operand.hbm [shape: f32[8,128], index: 6, kind: output, shape index: {}]  }
   0x1   :  { %12 = vsyncpa [#allocation7], 0 }
   0x2   :  { %13 = vsyncpa [#allocation10], 0  ;;  %s32_s23 = sshll.u32 %s2711_s1, 4  ;;  %s33_s23 = int_to_ptr.hbm [resolvable:$true] %s32_s23 }
   0x3   :  { %14 = vsyncpa [#allocation5], 0  ;;  %s2492_s24 = smov [#allocation6]   ;;  %s19_s28 = sshll.u32 %s2710_s0, 4  ;;  %s20_s28 = int_to_ptr.hbm [resolvable:$true] %s19_s28 }
   0x4   :  { %s34_s25 = sshll.u32 %s2492_s24, 4  ;;  %s2493_s29 = smov 256   ;;  %s35_s25 = int_to_ptr.vmem [resolvable:$true] %s34_s25 }
   0x5   :  { %s2494_s30 = smov 16   ;;  %s2495_s7 = smov [#allocation3]  }
   0x6   :  { %40 = dma.hbm_to_vmem [thread:$0]  %s33_s23, 8192, %s35_s25, [#allocation7], %s2493_s29, %s2493_s29, %s2494_s30  }
   0x7   :  { %s21_s8 = sshll.u32 %s2495_s7, 4  ;;  %s2496_s9 = smov 128   ;;  %s22_s8 = int_to_ptr.vmem [resolvable:$true] %s21_s8 }
   0x8   :  { %s2497_s10 = smov 8   ;;  %s45_s12 = sshll.u32 %s2712_s2, 4  ;;  %s46_s12 = int_to_ptr.hbm [resolvable:$true] %s45_s12 }
   0x9   :  { %27 = dma.hbm_to_vmem [thread:$0]  %s20_s28, 2048, %s22_s8, [#allocation4], %s2496_s9, %s2496_s9, %s2497_s10  }
   0xa   :  { %s2498_s13 = smov [#allocation8]   ;;  %s60_s16 = sshll.u32 %s2714_s4, 4  ;;  %s61_s16 = int_to_ptr.hbm [resolvable:$true] %s60_s16 }
   0xb   :  { %s47_s14 = sshll.u32 %s2498_s13, 4  ;;  %s2499_s17 = smov 64   ;;  %s48_s14 = int_to_ptr.vmem [resolvable:$true] %s47_s14 }
   0xc   :  { %s2500_s18 = smov 4   ;;  %s2501_s19 = smov [#allocation9]  }
   0xd   :  { %53 = dma.hbm_to_vmem [thread:$0]  %s46_s12, 4096, %s48_s14, [#allocation7], %s2499_s17, %s2499_s17, %s2500_s18  }
   0xe   :  { %s62_s20 = sshll.u32 %s2501_s19, 4  ;;  %s63_s20 = int_to_ptr.vmem [resolvable:$true] %s62_s20 }
   0xf   :  { %68 = dma.hbm_to_vmem [thread:$0]  %s61_s16, 1024, %s63_s20, [#allocation10], %s2499_s17, %s2499_s17, %s2500_s18  }
  0x10   :  { %2484 = dma.done.wait [#allocation4], 2048  }
  0x11   :  { %2485 = vsyncadd [#allocation4], 4294965248 }
  0x12   :  { %2486 = dma.done.wait [#allocation7], 12288  }
  0x13   :  { %2487 = vsyncadd [#allocation7], 4294955008 }
  0x14   :  { %2488 = dma.done.wait [#allocation10], 1024  }
  0x15   :  { %2489 = vsyncadd [#allocation10], 4294966272  ;;  %v1929_v0 = vld [vmem:[#allocation6 + $0xe0] sm:$0xf]  ;;  %v2277_v1 = vld [vmem:[#allocation6 + $0xec] sm:$0xf0] }
  0x16   :  { %v2057_v2 = vld [vmem:[#allocation6 + $0x1e0] sm:$0xf]  ;;  %v1930_v3 = vor.u32 %v2277_v1, %v1929_v0  ;;  %v2309_v4 = vld [vmem:[#allocation6 + $0x1ec] sm:$0xf0]  ;;  %v2275_v5 = vld [vmem:[#allocation6 + $0xe4] sm:$0xf] }
  0x17   :  { %v1931_v6 = vld [vmem:[#allocation6 + $0xf0] sm:$0xf0]  ;;  %v2058_v7 = vor.u32 %v2309_v4, %v2057_v2  ;;  %v2307_v9 = vld [vmem:[#allocation6 + $0x1e4] sm:$0xf]  ;;  %v1913_v11 = vld [vmem:[#allocation6 + $0xc0] sm:$0xf] }
  0x18   :  { %v1934_v8 = vor.u32 %v2275_v5, %v1931_v6  ;;  %v2059_v10 = vld [vmem:[#allocation6 + $0x1f0] sm:$0xf0]  ;;  %570 = vmatpush.bf16.msra.mxu0 %v1930_v3  ;;  %v2273_v13 = vld [vmem:[#allocation6 + $0xcc] sm:$0xf0]  ;;  %v2041_v14 = vld [vmem:[#allocation6 + $0x1c0] sm:$0xf] }
  0x19   :  { %v2062_v12 = vor.u32 %v2307_v9, %v2059_v10  ;;  %v2305_v15 = vld [vmem:[#allocation6 + $0x1cc] sm:$0xf0]  ;;  %619 = vmatpush.bf16.msra.mxu1 %v2058_v7  ;;  %v1914_v16 = vor.u32 %v2273_v13, %v1913_v11  ;;  %v2271_v18 = vld [vmem:[#allocation6 + $0xc4] sm:$0xf]  ;;  %v1915_v19 = vld [vmem:[#allocation6 + $0xd0] sm:$0xf0] }
  0x1a   :  { %668 = vmatpush.bf16.msra.mxu2 %v1934_v8  ;;  %v2042_v17 = vor.u32 %v2305_v15, %v2041_v14  ;;  %v2303_v20 = vld [vmem:[#allocation6 + $0x1c4] sm:$0xf]  ;;  %v1918_v21 = vor.u32 %v2271_v18, %v1915_v19  ;;  %v2043_v22 = vld [vmem:[#allocation6 + $0x1d0] sm:$0xf0]  ;;  %v1897_v23 = vld [vmem:[#allocation6 + $0xa0] sm:$0xf] }
  0x1b   :  { %717 = vmatpush.bf16.msra.mxu3 %v2062_v12  ;;  %v2269_v24 = vld [vmem:[#allocation6 + $0xac] sm:$0xf0]  ;;  %v2046_v25 = vor.u32 %v2303_v20, %v2043_v22  ;;  %v2025_v26 = vld [vmem:[#allocation6 + $0x1a0] sm:$0xf]  ;;  %v2267_v28 = vld [vmem:[#allocation6 + $0xa4] sm:$0xf] }
  0x1c   :  { %v2301_v27 = vld [vmem:[#allocation6 + $0x1ac] sm:$0xf0]  ;;  %571 = vmatpush.bf16.msra.mxu0 %v1914_v16  ;;  %v1898_v29 = vor.u32 %v2269_v24, %v1897_v23  ;;  %v1899_v30 = vld [vmem:[#allocation6 + $0xb0] sm:$0xf0]  ;;  %v2299_v31 = vld [vmem:[#allocation6 + $0x1a4] sm:$0xf] }
  0x1d   :  { %v2027_v32 = vld [vmem:[#allocation6 + $0x1b0] sm:$0xf0]  ;;  %620 = vmatpush.bf16.msra.mxu1 %v2042_v17  ;;  %v2026_v33 = vor.u32 %v2301_v27, %v2025_v26  ;;  %v1902_v34 = vor.u32 %v2267_v28, %v1899_v30  ;;  %v1881_v35 = vld [vmem:[#allocation6 + $0x80] sm:$0xf]  ;;  %v2265_v36 = vld [vmem:[#allocation6 + $0x8c] sm:$0xf0] }
  0x1e   :  { %669 = vmatpush.bf16.msra.mxu2 %v1918_v21  ;;  %v2009_v37 = vld [vmem:[#allocation6 + $0x180] sm:$0xf]  ;;  %v2030_v38 = vor.u32 %v2299_v31, %v2027_v32  ;;  %v2297_v39 = vld [vmem:[#allocation6 + $0x18c] sm:$0xf0]  ;;  %v2263_v40 = vld [vmem:[#allocation6 + $0x84] sm:$0xf]  ;;  %v1882_v44 = vor.u32 %v2265_v36, %v1881_v35 }
  0x1f   :  { %718 = vmatpush.bf16.msra.mxu3 %v2046_v25  ;;  %v1883_v41 = vld [vmem:[#allocation6 + $0x90] sm:$0xf0]  ;;  %v2295_v42 = vld [vmem:[#allocation6 + $0x184] sm:$0xf]  ;;  %v2010_v45 = vor.u32 %v2297_v39, %v2009_v37  ;;  %v1865_v47 = vld [vmem:[#allocation6 + $0x60] sm:$0xf] }
  0x20   :  { %v2011_v43 = vld [vmem:[#allocation6 + $0x190] sm:$0xf0]  ;;  %572 = vmatpush.bf16.msra.mxu0 %v1898_v29  ;;  %v1886_v46 = vor.u32 %v2263_v40, %v1883_v41  ;;  %v2261_v48 = vld [vmem:[#allocation6 + $0x6c] sm:$0xf0]  ;;  %v1993_v49 = vld [vmem:[#allocation6 + $0x160] sm:$0xf] }
  0x21   :  { %621 = vmatpush.bf16.msra.mxu1 %v2026_v33  ;;  %v2014_v50 = vor.u32 %v2295_v42, %v2011_v43  ;;  %v2293_v51 = vld [vmem:[#allocation6 + $0x16c] sm:$0xf0]  ;;  %v2259_v52 = vld [vmem:[#allocation6 + $0x64] sm:$0xf]  ;;  %v1867_v53 = vld [vmem:[#allocation6 + $0x70] sm:$0xf0]  ;;  %v1866_v56 = vor.u32 %v2261_v48, %v1865_v47 }
  0x22   :  { %670 = vmatpush.bf16.msra.mxu2 %v1902_v34  ;;  %v2291_v54 = vld [vmem:[#allocation6 + $0x164] sm:$0xf]  ;;  %v1995_v55 = vld [vmem:[#allocation6 + $0x170] sm:$0xf0]  ;;  %v1994_v57 = vor.u32 %v2293_v51, %v1993_v49  ;;  %v1870_v58 = vor.u32 %v2259_v52, %v1867_v53  ;;  %v1849_v59 = vld [vmem:[#allocation6 + $0x40] sm:$0xf] }
  0x23   :  { %719 = vmatpush.bf16.msra.mxu3 %v2030_v38  ;;  %v2257_v60 = vld [vmem:[#allocation6 + $0x4c] sm:$0xf0]  ;;  %v1977_v61 = vld [vmem:[#allocation6 + $0x140] sm:$0xf]  ;;  %v1998_v62 = vor.u32 %v2291_v54, %v1995_v55  ;;  %v2255_v0 = vld [vmem:[#allocation6 + $0x44] sm:$0xf] }
  0x24   :  { %573 = vmatpush.bf16.msra.mxu0 %v1882_v44  ;;  %v2289_v63 = vld [vmem:[#allocation6 + $0x14c] sm:$0xf0]  ;;  %v1851_v1 = vld [vmem:[#allocation6 + $0x50] sm:$0xf0]  ;;  %v2287_v2 = vld [vmem:[#allocation6 + $0x144] sm:$0xf]  ;;  %v1850_v4 = vor.u32 %v2257_v60, %v1849_v59 }
  0x25   :  { %622 = vmatpush.bf16.msra.mxu1 %v2010_v45  ;;  %v1979_v3 = vld [vmem:[#allocation6 + $0x150] sm:$0xf0]  ;;  %v1978_v5 = vor.u32 %v2289_v63, %v1977_v61  ;;  %v1854_v6 = vor.u32 %v2255_v0, %v1851_v1  ;;  %v1833_v7 = vld [vmem:[#allocation6 + $0x20] sm:$0xf]  ;;  %v2253_v8 = vld [vmem:[#allocation6 + $0x2c] sm:$0xf0] }
  0x26   :  { %671 = vmatpush.bf16.msra.mxu2 %v1886_v46  ;;  %v1961_v9 = vld [vmem:[#allocation6 + $0x120] sm:$0xf]  ;;  %v1982_v10 = vor.u32 %v2287_v2, %v1979_v3  ;;  %v2285_v11 = vld [vmem:[#allocation6 + $0x12c] sm:$0xf0]  ;;  %v2251_v12 = vld [vmem:[#allocation6 + $0x24] sm:$0xf]  ;;  %v1834_v16 = vor.u32 %v2253_v8, %v1833_v7 }
  0x27   :  { %720 = vmatpush.bf16.msra.mxu3 %v2014_v50  ;;  %v1835_v13 = vld [vmem:[#allocation6 + $0x30] sm:$0xf0]  ;;  %v2283_v14 = vld [vmem:[#allocation6 + $0x124] sm:$0xf]  ;;  %v1817_v17 = vld [vmem:[#allocation6] sm:$0xf]  ;;  %v1962_v20 = vor.u32 %v2285_v11, %v1961_v9 }
  0x28   :  { %574 = vmatpush.bf16.msra.mxu0 %v1866_v56  ;;  %v1963_v15 = vld [vmem:[#allocation6 + $0x130] sm:$0xf0]  ;;  %v2249_v18 = vld [vmem:[#allocation6 + $0xc] sm:$0xf0]  ;;  %v1945_v19 = vld [vmem:[#allocation6 + $0x100] sm:$0xf]  ;;  %v1838_v21 = vor.u32 %v2251_v12, %v1835_v13 }
  0x29   :  { %623 = vmatpush.bf16.msra.mxu1 %v1994_v57  ;;  %v2281_v22 = vld [vmem:[#allocation6 + $0x10c] sm:$0xf0]  ;;  %v2247_v23 = vld [vmem:[#allocation6 + $0x4] sm:$0xf]  ;;  %v1819_v24 = vld [vmem:[#allocation6 + $0x10] sm:$0xf0]  ;;  %v1966_v25 = vor.u32 %v2283_v14, %v1963_v15  ;;  %v1818_v32 = vor.u32 %v2249_v18, %v1817_v17 }
  0x2a   :  { %672 = vmatpush.bf16.msra.mxu2 %v1870_v58  ;;  %v2279_v26 = vld [vmem:[#allocation6 + $0x104] sm:$0xf]  ;;  %v1947_v27 = vld [vmem:[#allocation6 + $0x110] sm:$0xf0]  ;;  %v1753_v28 = vld [vmem:[#allocation3] sm:$0xf]  ;;  %v1946_v36 = vor.u32 %v2281_v22, %v1945_v19  ;;  %v1822_v37 = vor.u32 %v2247_v23, %v1819_v24 }
  0x2b   :  { %721 = vmatpush.bf16.msra.mxu3 %v1998_v62  ;;  %v2232_v29 = vld [vmem:[#allocation3 + $0x4] sm:$0xf0]  ;;  %v2276_v30 = vld [vmem:[#allocation6 + $0xec] sm:$0xf]  ;;  %v1939_v31 = vld [vmem:[#allocation6 + $0xf8] sm:$0xf0]  ;;  %v1950_v41 = vor.u32 %v2279_v26, %v1947_v27 }
  0x2c   :  { %575 = vmatpush.bf16.msra.mxu0 %v1850_v4  ;;  %v2231_v33 = vld [vmem:[#allocation3 + $0x4] sm:$0xf]  ;;  %v2308_v34 = vld [vmem:[#allocation6 + $0x1ec] sm:$0xf]  ;;  %v2067_v35 = vld [vmem:[#allocation6 + $0x1f8] sm:$0xf0]  ;;  %v1942_v42 = vor.u32 %v2276_v30, %v1939_v31  ;;  %v2550_v46 = vor.u32 %v2232_v29, %v1753_v28 }
  0x2d   :  { %624 = vmatpush.bf16.msra.mxu1 %v1978_v5  ;;  %v1755_v38 = vld [vmem:[#allocation3 + $0x8] sm:$0xf0]  ;;  %v1937_v39 = vld [vmem:[#allocation6 + $0xe8] sm:$0xf]  ;;  %v2278_v40 = vld [vmem:[#allocation6 + $0xf4] sm:$0xf0]  ;;  %v2070_v47 = vor.u32 %v2308_v34, %v2067_v35 }
  0x2e   :  { %673 = vmatpush.bf16.msra.mxu2 %v1854_v6  ;;  %v2065_v43 = vld [vmem:[#allocation6 + $0x1e8] sm:$0xf]  ;;  %v2310_v44 = vld [vmem:[#allocation6 + $0x1f4] sm:$0xf0]  ;;  %v2272_v45 = vld [vmem:[#allocation6 + $0xcc] sm:$0xf]  ;;  %v2552_v49 = vor.u32 %v2231_v33, %v1755_v38  ;;  %v1938_v52 = vor.u32 %v2278_v40, %v1937_v39 }
  0x2f   :  { %722 = vmatpush.bf16.msra.mxu3 %v1982_v10  ;;  %v1923_v48 = vld [vmem:[#allocation6 + $0xd8] sm:$0xf0]  ;;  %v2304_v50 = vld [vmem:[#allocation6 + $0x1cc] sm:$0xf]  ;;  %v2066_v53 = vor.u32 %v2310_v44, %v2065_v43  ;;  %v1921_v55 = vld [vmem:[#allocation6 + $0xc8] sm:$0xf] }
  0x30   :  { %576 = vmatpush.bf16.msra.mxu0 %v1834_v16  ;;  %v2051_v51 = vld [vmem:[#allocation6 + $0x1d8] sm:$0xf0]  ;;  %v1926_v54 = vor.u32 %v2272_v45, %v1923_v48  ;;  %v2274_v56 = vld [vmem:[#allocation6 + $0xd4] sm:$0xf0]  ;;  %v2049_v58 = vld [vmem:[#allocation6 + $0x1c8] sm:$0xf] }
  0x31   :  { %625 = vmatpush.bf16.msra.mxu1 %v1962_v20  ;;  %v2054_v57 = vor.u32 %v2304_v50, %v2051_v51  ;;  %v2306_v59 = vld [vmem:[#allocation6 + $0x1d4] sm:$0xf0]  ;;  %v1922_v60 = vor.u32 %v2274_v56, %v1921_v55  ;;  %v2268_v61 = vld [vmem:[#allocation6 + $0xac] sm:$0xf]  ;;  %v1907_v62 = vld [vmem:[#allocation6 + $0xb8] sm:$0xf0] }
  0x32   :  { %674 = vmatpush.bf16.msra.mxu2 %v1838_v21  ;;  %v2300_v63 = vld [vmem:[#allocation6 + $0x1ac] sm:$0xf]  ;;  %v2050_v0 = vor.u32 %v2306_v59, %v2049_v58  ;;  %v1910_v1 = vor.u32 %v2268_v61, %v1907_v62  ;;  %v2035_v2 = vld [vmem:[#allocation6 + $0x1b8] sm:$0xf0]  ;;  %v1905_v3 = vld [vmem:[#allocation6 + $0xa8] sm:$0xf] }
  0x33   :  { %723 = vmatpush.bf16.msra.mxu3 %v1966_v25  ;;  %v2270_v4 = vld [vmem:[#allocation6 + $0xb4] sm:$0xf0]  ;;  %v2038_v5 = vor.u32 %v2300_v63, %v2035_v2  ;;  %v2033_v6 = vld [vmem:[#allocation6 + $0x1a8] sm:$0xf]  ;;  %v1761_v10 = vld [vmem:[#allocation3 + $0x10] sm:$0xf] }
  0x34   :  { %577 = vmatpush.bf16.msra.mxu0 %v1818_v32  ;;  %v2302_v7 = vld [vmem:[#allocation6 + $0x1b4] sm:$0xf0]  ;;  %v1906_v8 = vor.u32 %v2270_v4, %v1905_v3  ;;  %v2233_v12 = vld [vmem:[#allocation3 + $0x14] sm:$0xf]  ;;  %v1763_v13 = vld [vmem:[#allocation3 + $0x18] sm:$0xf0] }
  0x35   :  { %626 = vmatpush.bf16.msra.mxu1 %v1946_v36  ;;  %v2034_v9 = vor.u32 %v2302_v7, %v2033_v6  ;;  %v2234_v11 = vld [vmem:[#allocation3 + $0x14] sm:$0xf0]  ;;  %v2560_v15 = vor.u32 %v2233_v12, %v1763_v13  ;;  %v2264_v16 = vld [vmem:[#allocation6 + $0x8c] sm:$0xf]  ;;  %v1891_v17 = vld [vmem:[#allocation6 + $0x98] sm:$0xf0] }
  0x36   :  { %675 = vmatpush.bf16.msra.mxu2 %v1822_v37  ;;  %v2558_v14 = vor.u32 %v2234_v11, %v1761_v10  ;;  %v2296_v18 = vld [vmem:[#allocation6 + $0x18c] sm:$0xf]  ;;  %v1894_v19 = vor.u32 %v2264_v16, %v1891_v17  ;;  %v2019_v20 = vld [vmem:[#allocation6 + $0x198] sm:$0xf0]  ;;  %v1889_v21 = vld [vmem:[#allocation6 + $0x88] sm:$0xf] }
  0x37   :  { %724 = vmatpush.bf16.msra.mxu3 %v1950_v41  ;;  %578 = vmatmul.bf16.vlgmr.msra.gmra.mxu0 %v2550_v46  ;;  %v2266_v22 = vld [vmem:[#allocation6 + $0x94] sm:$0xf0]  ;;  %v2022_v23 = vor.u32 %v2296_v18, %v2019_v20  ;;  %v2017_v25 = vld [vmem:[#allocation6 + $0x188] sm:$0xf]  ;;  %v1769_v28 = vld [vmem:[#allocation3 + $0x20] sm:$0xf] }
  0x38   :  { %627 = vmatmul.bf16.vlgmr.msra.gmra.mxu1 %v2552_v49  ;;  %766 = vmatpush.bf16.msrb.mxu0 %v1938_v52  ;;  %v1890_v24 = vor.u32 %v2266_v22, %v1889_v21  ;;  %v2298_v26 = vld [vmem:[#allocation6 + $0x194] sm:$0xf0]  ;;  %v2236_v29 = vld [vmem:[#allocation3 + $0x24] sm:$0xf0]  ;;  %v2235_v30 = vld [vmem:[#allocation3 + $0x24] sm:$0xf] }
  0x39   :  { %676 = vmatmul.bf16.vlgmr.msra.gmra.mxu2 %v2550_v46  ;;  %815 = vmatpush.bf16.msrb.mxu1 %v2066_v53  ;;  %v2018_v27 = vor.u32 %v2298_v26, %v2017_v25  ;;  %v1771_v31 = vld [vmem:[#allocation3 + $0x28] sm:$0xf0]  ;;  %v2566_v32 = vor.u32 %v2236_v29, %v1769_v28  ;;  %v1875_v35 = vld [vmem:[#allocation6 + $0x78] sm:$0xf0]  ;;  %v1873_v39 = vld [vmem:[#allocation6 + $0x68] sm:$0xf] }
  0x3a   :  { %864 = vmatpush.bf16.msrb.mxu2 %v1942_v42  ;;  %725 = vmatmul.bf16.vlgmr.msra.gmra.mxu3 %v2552_v49  ;;  %v2568_v33 = vor.u32 %v2235_v30, %v1771_v31  ;;  %v2260_v34 = vld [vmem:[#allocation6 + $0x6c] sm:$0xf]  ;;  %v2003_v38 = vld [vmem:[#allocation6 + $0x178] sm:$0xf0]  ;;  %v2262_v40 = vld [vmem:[#allocation6 + $0x74] sm:$0xf0] }
  0x3b   :  { %913 = vmatpush.bf16.msrb.mxu3 %v2070_v47  ;;  %v2292_v36 = vld [vmem:[#allocation6 + $0x16c] sm:$0xf]  ;;  %v1878_v37 = vor.u32 %v2260_v34, %v1875_v35  ;;  %v1874_v42 = vor.u32 %v2262_v40, %v1873_v39  ;;  %v2001_v43 = vld [vmem:[#allocation6 + $0x168] sm:$0xf]  ;;  %v2294_v44 = vld [vmem:[#allocation6 + $0x174] sm:$0xf0] }
  0x3c   :  { %767 = vmatpush.bf16.msrb.mxu0 %v1922_v60  ;;  %v2006_v41 = vor.u32 %v2292_v36, %v2003_v38  ;;  %v2002_v45 = vor.u32 %v2294_v44, %v2001_v43  ;;  %v1777_v47 = vld [vmem:[#allocation3 + $0x30] sm:$0xf]  ;;  %v2238_v48 = vld [vmem:[#allocation3 + $0x34] sm:$0xf0]  ;;  %v2237_v50 = vld [vmem:[#allocation3 + $0x34] sm:$0xf] }
  0x3d   :  { %816 = vmatpush.bf16.msrb.mxu1 %v2050_v0  ;;  %v1779_v51 = vld [vmem:[#allocation3 + $0x38] sm:$0xf0]  ;;  %v2574_v52 = vor.u32 %v2238_v48, %v1777_v47  ;;  %v2288_v56 = vld [vmem:[#allocation6 + $0x14c] sm:$0xf]  ;;  %v1857_v59 = vld [vmem:[#allocation6 + $0x48] sm:$0xf] }
  0x3e   :  { %865 = vmatpush.bf16.msrb.mxu2 %v1926_v54  ;;  %v2576_v53 = vor.u32 %v2237_v50, %v1779_v51  ;;  %v2256_v54 = vld [vmem:[#allocation6 + $0x4c] sm:$0xf]  ;;  %v1859_v55 = vld [vmem:[#allocation6 + $0x58] sm:$0xf0]  ;;  %v2258_v60 = vld [vmem:[#allocation6 + $0x54] sm:$0xf0] }
  0x3f   :  { %914 = vmatpush.bf16.msrb.mxu3 %v2054_v57  ;;  %v1862_v57 = vor.u32 %v2256_v54, %v1859_v55  ;;  %v1987_v58 = vld [vmem:[#allocation6 + $0x158] sm:$0xf0]  ;;  %v1858_v62 = vor.u32 %v2258_v60, %v1857_v59  ;;  %v1985_v63 = vld [vmem:[#allocation6 + $0x148] sm:$0xf]  ;;  %v2290_v0 = vld [vmem:[#allocation6 + $0x154] sm:$0xf0] }
  0x40   :  { %768 = vmatpush.bf16.msrb.mxu0 %v1906_v8  ;;  %v1990_v61 = vor.u32 %v2288_v56, %v1987_v58  ;;  %v1785_v2 = vld [vmem:[#allocation3 + $0x40] sm:$0xf]  ;;  %v2240_v3 = vld [vmem:[#allocation3 + $0x44] sm:$0xf0]  ;;  %v2239_v4 = vld [vmem:[#allocation3 + $0x44] sm:$0xf] }
  0x41   :  { %817 = vmatpush.bf16.msrb.mxu1 %v2034_v9  ;;  %v2582_v6 = vor.u32 %v2240_v3, %v1785_v2  ;;  %v2252_v8 = vld [vmem:[#allocation6 + $0x2c] sm:$0xf]  ;;  %v1843_v9 = vld [vmem:[#allocation6 + $0x38] sm:$0xf0]  ;;  %v1841_v13 = vld [vmem:[#allocation6 + $0x28] sm:$0xf] }
  0x42   :  { %866 = vmatpush.bf16.msrb.mxu2 %v1910_v1  ;;  %v1986_v1 = vor.u32 %v2290_v0, %v1985_v63  ;;  %v2284_v10 = vld [vmem:[#allocation6 + $0x12c] sm:$0xf]  ;;  %v1846_v11 = vor.u32 %v2252_v8, %v1843_v9  ;;  %v1971_v12 = vld [vmem:[#allocation6 + $0x138] sm:$0xf0]  ;;  %v2254_v16 = vld [vmem:[#allocation6 + $0x34] sm:$0xf0] }
  0x43   :  { %915 = vmatpush.bf16.msrb.mxu3 %v2038_v5  ;;  %v1787_v5 = vld [vmem:[#allocation3 + $0x48] sm:$0xf0]  ;;  %v1974_v17 = vor.u32 %v2284_v10, %v1971_v12  ;;  %v1842_v18 = vor.u32 %v2254_v16, %v1841_v13  ;;  %v2286_v20 = vld [vmem:[#allocation6 + $0x134] sm:$0xf0]  ;;  %v1793_v22 = vld [vmem:[#allocation3 + $0x50] sm:$0xf] }
  0x44   :  { %769 = vmatpush.bf16.msrb.mxu0 %v1890_v24  ;;  %v2584_v7 = vor.u32 %v2239_v4, %v1787_v5  ;;  %v2241_v24 = vld [vmem:[#allocation3 + $0x54] sm:$0xf]  ;;  %v1795_v25 = vld [vmem:[#allocation3 + $0x58] sm:$0xf0]  ;;  %v2248_v28 = vld [vmem:[#allocation6 + $0xc] sm:$0xf] }
  0x45   :  { %818 = vmatpush.bf16.msrb.mxu1 %v2018_v27  ;;  %v2592_v27 = vor.u32 %v2241_v24, %v1795_v25  ;;  %v1827_v29 = vld [vmem:[#allocation6 + $0x18] sm:$0xf0]  ;;  %v2280_v30 = vld [vmem:[#allocation6 + $0x10c] sm:$0xf]  ;;  %v1825_v35 = vld [vmem:[#allocation6 + $0x8] sm:$0xf] }
  0x46   :  { %867 = vmatpush.bf16.msrb.mxu2 %v1894_v19  ;;  %v1969_v19 = vld [vmem:[#allocation6 + $0x128] sm:$0xf]  ;;  %v1830_v31 = vor.u32 %v2248_v28, %v1827_v29  ;;  %v1955_v34 = vld [vmem:[#allocation6 + $0x118] sm:$0xf0]  ;;  %v2250_v36 = vld [vmem:[#allocation6 + $0x14] sm:$0xf0] }
  0x47   :  { %583 = vmatmul.bf16.gmra.mxu0 %v2558_v14  ;;  %916 = vmatpush.bf16.msrb.mxu3 %v2022_v23  ;;  %v1970_v21 = vor.u32 %v2286_v20, %v1969_v19  ;;  %v2242_v23 = vld [vmem:[#allocation3 + $0x54] sm:$0xf0]  ;;  %v1826_v38 = vor.u32 %v2250_v36, %v1825_v35  ;;  %v1953_v39 = vld [vmem:[#allocation6 + $0x108] sm:$0xf]  ;;  %v2243_v44 = vld [vmem:[#allocation3 + $0x64] sm:$0xf] }
  0x48   :  { %632 = vmatmul.bf16.gmra.mxu1 %v2560_v15  ;;  %770 = vmatpush.bf16.msrb.mxu0 %v1874_v42  ;;  %v2590_v26 = vor.u32 %v2242_v23, %v1793_v22  ;;  %v2282_v40 = vld [vmem:[#allocation6 + $0x114] sm:$0xf0]  ;;  %v1801_v42 = vld [vmem:[#allocation3 + $0x60] sm:$0xf]  ;;  %v2244_v43 = vld [vmem:[#allocation3 + $0x64] sm:$0xf0] }
  0x49   :  { %681 = vmatmul.bf16.gmra.mxu2 %v2558_v14  ;;  %819 = vmatpush.bf16.msrb.mxu1 %v2002_v45  ;;  %v1803_v45 = vld [vmem:[#allocation3 + $0x68] sm:$0xf0]  ;;  %v2598_v47 = vor.u32 %v2244_v43, %v1801_v42  ;;  %v1809_v50 = vld [vmem:[#allocation3 + $0x70] sm:$0xf]  ;;  %v2246_v51 = vld [vmem:[#allocation3 + $0x74] sm:$0xf0] }
  0x4a   :  { %730 = vmatmul.bf16.gmra.mxu3 %v2560_v15  ;;  %868 = vmatpush.bf16.msrb.mxu2 %v1878_v37  ;;  %v1958_v37 = vor.u32 %v2280_v30, %v1955_v34  ;;  %v2600_v48 = vor.u32 %v2243_v44, %v1803_v45  ;;  %v2245_v54 = vld [vmem:[#allocation3 + $0x74] sm:$0xf]  ;;  %v1811_v55 = vld [vmem:[#allocation3 + $0x78] sm:$0xf0]  ;;  %v2606_v56 = vor.u32 %v2246_v51, %v1809_v50  ;;  %vm1282_vm0 = vcmask 1041409   ;;  %s2502_s22 = smov [#allocation11]  }
  0x4b   :  { %917 = vmatpush.bf16.msrb.mxu3 %v2006_v41  ;;  %v1954_v41 = vor.u32 %v2282_v40, %v1953_v39  ;;  %vm1284_vm1 = vcmask 1042434   ;;  %vm1286_vm2 = vcmask 1043459   ;;  %vm1288_vm3 = vcmask 1044484   ;;  %s1737_s23 = sshll.u32 %s2502_s22, 4  ;;  %s1739_s26 = sshll.u32 %s2716_s6, 4  ;;  %s1738_s23 = int_to_ptr.vmem [resolvable:$true] %s1737_s23  ;;  %s1740_s26 = int_to_ptr.hbm [resolvable:$true] %s1739_s26 }
  0x4c   :  { %771 = vmatpush.bf16.msrb.mxu0 %v1858_v62  ;;  %vm1290_vm4 = vcmask 1045509   ;;  %vm1292_vm5 = vcmask 1046534   ;;  %vm1294_vm6 = vcmask 1047559  }
  0x4d   :  { %820 = vmatpush.bf16.msrb.mxu1 %v1986_v1 }
  0x4e   :  { %869 = vmatpush.bf16.msrb.mxu2 %v1862_v57  ;;  %v2608_v57 = vor.u32 %v2245_v54, %v1811_v55 }
  0x4f   :  { %918 = vmatpush.bf16.msrb.mxu3 %v1990_v61 }
  0x50   :  { %772 = vmatpush.bf16.msrb.mxu0 %v1842_v18 }
  0x51   :  { %821 = vmatpush.bf16.msrb.mxu1 %v1970_v21 }
  0x52   :  { %870 = vmatpush.bf16.msrb.mxu2 %v1846_v11 }
  0x53   :  { %919 = vmatpush.bf16.msrb.mxu3 %v1974_v17 }
  0x54   :  { %773 = vmatpush.bf16.msrb.mxu0 %v1826_v38 }
  0x55   :  { %822 = vmatpush.bf16.msrb.mxu1 %v1954_v41 }
  0x56   :  { %871 = vmatpush.bf16.msrb.mxu2 %v1830_v31 }
  0x57   :  { %588 = vmatmul.bf16.gmra.mxu0 %v2566_v32  ;;  %920 = vmatpush.bf16.msrb.mxu3 %v1958_v37 }
  0x58   :  { %637 = vmatmul.bf16.gmra.mxu1 %v2568_v33 }
  0x59   :  { %686 = vmatmul.bf16.gmra.mxu2 %v2566_v32 }
  0x5a   :  { %735 = vmatmul.bf16.gmra.mxu3 %v2568_v33 }
  0x67   :  { %593 = vmatmul.bf16.gmra.mxu0 %v2574_v52 }
  0x68   :  { %642 = vmatmul.bf16.gmra.mxu1 %v2576_v53 }
  0x69   :  { %691 = vmatmul.bf16.gmra.mxu2 %v2574_v52 }
  0x6a   :  { %740 = vmatmul.bf16.gmra.mxu3 %v2576_v53 }
  0x77   :  { %598 = vmatmul.bf16.gmra.mxu0 %v2582_v6 }
  0x78   :  { %647 = vmatmul.bf16.gmra.mxu1 %v2584_v7 }
  0x79   :  { %696 = vmatmul.bf16.gmra.mxu2 %v2582_v6 }
  0x7a   :  { %745 = vmatmul.bf16.gmra.mxu3 %v2584_v7 }
  0x87   :  { %603 = vmatmul.bf16.gmra.mxu0 %v2590_v26 }
  0x88   :  { %652 = vmatmul.bf16.gmra.mxu1 %v2592_v27 }
  0x89   :  { %701 = vmatmul.bf16.gmra.mxu2 %v2590_v26 }
  0x8a   :  { %750 = vmatmul.bf16.gmra.mxu3 %v2592_v27 }
  0x97   :  { %608 = vmatmul.bf16.gmra.mxu0 %v2598_v47 }
  0x98   :  { %657 = vmatmul.bf16.gmra.mxu1 %v2600_v48 }
  0x99   :  { %706 = vmatmul.bf16.gmra.mxu2 %v2598_v47 }
  0x9a   :  { %755 = vmatmul.bf16.gmra.mxu3 %v2600_v48 }
  0xa7   :  { %613 = vmatmul.bf16.gmra.mxu0 %v2606_v56 }
  0xa8   :  { %662 = vmatmul.bf16.gmra.mxu1 %v2608_v57 }
  0xa9   :  { %711 = vmatmul.bf16.gmra.mxu2 %v2606_v56 }
  0xaa   :  { %760 = vmatmul.bf16.gmra.mxu3 %v2608_v57 }
  0xb4   :  { %v579_v58 = vpop.f32.mrf.mxu0 }
  0xb5   :  { %v628_v59 = vpop.f32.mrf.mxu1 }
  0xb6   :  { %v629_v60 = vadd.f32 %v628_v59, %v579_v58 }
  0xb7   :  { %774 = vmatmul.bf16.vlgmr.msrb.gmra.mxu0 %v2550_v46 }
  0xb8   :  { %823 = vmatmul.bf16.vlgmr.msrb.gmra.mxu1 %v2552_v49  ;;  %v962_v3 = vmax.f32 %v629_v60, 0.0 }
  0xb9   :  { %872 = vmatmul.bf16.vlgmr.msrb.gmra.mxu2 %v2550_v46 }
  0xba   :  { %921 = vmatmul.bf16.vlgmr.msrb.gmra.mxu3 %v2552_v49 }
  0xbc   :  { %v677_v61 = vpop.f32.mrf.mxu2  ;;  %v581_v63 = vpop.f32.mrf.mxu0 }
  0xbd   :  { %v726_v62 = vpop.f32.mrf.mxu3  ;;  %v630_v1 = vpop.f32.mrf.mxu1 }
  0xbe   :  { %v727_v0 = vadd.f32 %v726_v62, %v677_v61  ;;  %v631_v2 = vadd.f32 %v630_v1, %v581_v63 }
  0xc0   :  { %v966_v4 = vmax.f32 %v631_v2, 0.0  ;;  %v963_v16 = vmax.f32 %v727_v0, 0.0 }
  0xc2   :  { %v1026_v5 = vadd.f32 %v966_v4, %v962_v3 }
  0xc4   :  { %v679_v8 = vpop.f32.mrf.mxu2  ;;  %v584_v10 = vpop.f32.mrf.mxu0  ;;  %v1027_v49 = vrot.slane %v1026_v5, 4 }
  0xc5   :  { %v728_v9 = vpop.f32.mrf.mxu3  ;;  %v633_v12 = vpop.f32.mrf.mxu1 }
  0xc6   :  { %v729_v11 = vadd.f32 %v728_v9, %v679_v8  ;;  %v634_v13 = vadd.f32 %v633_v12, %v584_v10  ;;  %v1028_v23 = vadd.f32 %v1027_v49, %v1026_v5 }
  0xc7   :  { %779 = vmatmul.bf16.gmra.mxu0 %v2558_v14 }
  0xc8   :  { %v967_v17 = vmax.f32 %v729_v11, 0.0  ;;  %828 = vmatmul.bf16.gmra.mxu1 %v2560_v15  ;;  %v970_v25 = vmax.f32 %v634_v13, 0.0  ;;  %v1029_v30 = vrot.slane %v1028_v23, 2 }
  0xc9   :  { %877 = vmatmul.bf16.gmra.mxu2 %v2558_v14 }
  0xca   :  { %v1033_v46 = vadd.f32 %v967_v17, %v963_v16  ;;  %926 = vmatmul.bf16.gmra.mxu3 %v2560_v15  ;;  %v1030_v39 = vadd.f32 %v1029_v30, %v1028_v23 }
  0xcc   :  { %v682_v18 = vpop.f32.mrf.mxu2  ;;  %v586_v20 = vpop.f32.mrf.mxu0  ;;  %v1034_v29 = vrot.slane %v1033_v46, 4  ;;  %v1031_v51 = vrot.slane %v1030_v39, 1 }
  0xcd   :  { %v731_v19 = vpop.f32.mrf.mxu3  ;;  %v635_v22 = vpop.f32.mrf.mxu1 }
  0xce   :  { %v732_v21 = vadd.f32 %v731_v19, %v682_v18  ;;  %v636_v24 = vadd.f32 %v635_v22, %v586_v20  ;;  %v1035_v37 = vadd.f32 %v1034_v29, %v1033_v46  ;;  %v1032_v2 = vadd.f32 %v1031_v51, %v1030_v39 }
  0xd0   :  { %v974_v28 = vmax.f32 %v636_v24, 0.0  ;;  %v971_v42 = vmax.f32 %v732_v21, 0.0  ;;  %v1036_v45 = vrot.slane %v1035_v37, 2 }
  0xd2   :  { %v1054_v31 = vadd.f32 %v974_v28, %v970_v25  ;;  %v1037_v62 = vadd.f32 %v1036_v45, %v1035_v37 }
  0xd4   :  { %v684_v34 = vpop.f32.mrf.mxu2  ;;  %v1055_v35 = vrot.slane %v1054_v31, 4  ;;  %v589_v14 = vpop.f32.mrf.mxu0  ;;  %v1038_v9 = vrot.slane %v1037_v62, 1 }
  0xd5   :  { %v733_v36 = vpop.f32.mrf.mxu3  ;;  %v638_v15 = vpop.f32.mrf.mxu1 }
  0xd6   :  { %v734_v38 = vadd.f32 %v733_v36, %v684_v34  ;;  %v1056_v40 = vadd.f32 %v1055_v35, %v1054_v31  ;;  %v639_v41 = vadd.f32 %v638_v15, %v589_v14  ;;  %v1039_v49 = vadd.f32 %v1038_v9, %v1037_v62 }
  0xd7   :  { %784 = vmatmul.bf16.gmra.mxu0 %v2566_v32 }
  0xd8   :  { %v975_v43 = vmax.f32 %v734_v38, 0.0  ;;  %v1057_v44 = vrot.slane %v1056_v40, 2  ;;  %833 = vmatmul.bf16.gmra.mxu1 %v2568_v33  ;;  %v978_v8 = vmax.f32 %v639_v41, 0.0 }
  0xd9   :  { %882 = vmatmul.bf16.gmra.mxu2 %v2566_v32 }
  0xda   :  { %v1061_v50 = vadd.f32 %v975_v43, %v971_v42  ;;  %931 = vmatmul.bf16.gmra.mxu3 %v2568_v33  ;;  %v1058_v54 = vadd.f32 %v1057_v44, %v1056_v40 }
  0xdc   :  { %v1062_v55 = vrot.slane %v1061_v50, 4  ;;  %v687_v58 = vpop.f32.mrf.mxu2  ;;  %v1059_v59 = vrot.slane %v1058_v54, 1  ;;  %v591_v61 = vpop.f32.mrf.mxu0 }
  0xdd   :  { %v736_v60 = vpop.f32.mrf.mxu3  ;;  %v640_v1 = vpop.f32.mrf.mxu1 }
  0xde   :  { %v1063_v63 = vadd.f32 %v1062_v55, %v1061_v50  ;;  %v737_v0 = vadd.f32 %v736_v60, %v687_v58  ;;  %v1060_v3 = vadd.f32 %v1059_v59, %v1058_v54  ;;  %v641_v4 = vadd.f32 %v640_v1, %v591_v61 }
  0xe0   :  { %v1064_v32 = vrot.slane %v1063_v63, 2  ;;  %v1283_v5 = vsel %vm1282_vm0, %v1060_v3, %v1032_v2  ;;  %v982_v33 = vmax.f32 %v641_v4, 0.0  ;;  %v979_v24 = vmax.f32 %v737_v0, 0.0 }
  0xe2   :  { %v1065_v10 = vadd.f32 %v1064_v32, %v1063_v63  ;;  %v1082_v11 = vadd.f32 %v982_v33, %v978_v8 }
  0xe4   :  { %v1066_v12 = vrot.slane %v1065_v10, 1  ;;  %v689_v13 = vpop.f32.mrf.mxu2  ;;  %v1083_v16 = vrot.slane %v1082_v11, 4  ;;  %v594_v46 = vpop.f32.mrf.mxu0 }
  0xe5   :  { %v738_v17 = vpop.f32.mrf.mxu3  ;;  %v643_v20 = vpop.f32.mrf.mxu1 }
  0xe6   :  { %v1067_v18 = vadd.f32 %v1066_v12, %v1065_v10  ;;  %v739_v19 = vadd.f32 %v738_v17, %v689_v13  ;;  %v1084_v21 = vadd.f32 %v1083_v16, %v1082_v11  ;;  %v644_v22 = vadd.f32 %v643_v20, %v594_v46 }
  0xe7   :  { %789 = vmatmul.bf16.gmra.mxu0 %v2574_v52 }
  0xe8   :  { %v1296_v23 = vsel %vm1282_vm0, %v1067_v18, %v1039_v49  ;;  %v983_v25 = vmax.f32 %v739_v19, 0.0  ;;  %v1085_v28 = vrot.slane %v1084_v21, 2  ;;  %838 = vmatmul.bf16.gmra.mxu1 %v2576_v53  ;;  %v986_v43 = vmax.f32 %v644_v22, 0.0  ;;  %v2326_v22 = vld [vmem:[#allocation8 + $0x78] sm:$0xff] }
  0xe9   :  { %887 = vmatmul.bf16.gmra.mxu2 %v2574_v52  ;;  %1609 = vmatpush.bf16.msra.mxu1 %v2326_v22 }
  0xea   :  { %v1089_v29 = vadd.f32 %v983_v25, %v979_v24  ;;  %936 = vmatmul.bf16.gmra.mxu3 %v2576_v53  ;;  %v1086_v30 = vadd.f32 %v1085_v28, %v1084_v21  ;;  %v2317_v21 = vld [vmem:[#allocation8 + $0x30] sm:$0xff]  ;;  %v2316_v24 = vld [vmem:[#allocation8 + $0x28] sm:$0xff] }
  0xec   :  { %v1090_v31 = vrot.slane %v1089_v29, 4  ;;  %v692_v34 = vpop.f32.mrf.mxu2  ;;  %v1087_v35 = vrot.slane %v1086_v30, 1  ;;  %v596_v14 = vpop.f32.mrf.mxu0 }
  0xed   :  { %v741_v36 = vpop.f32.mrf.mxu3  ;;  %v645_v15 = vpop.f32.mrf.mxu1 }
  0xee   :  { %v1091_v37 = vadd.f32 %v1090_v31, %v1089_v29  ;;  %v742_v38 = vadd.f32 %v741_v36, %v692_v34  ;;  %v1088_v39 = vadd.f32 %v1087_v35, %v1086_v30  ;;  %v646_v40 = vadd.f32 %v645_v15, %v596_v14  ;;  %v2325_v30 = vld [vmem:[#allocation8 + $0x70] sm:$0xff]  ;;  %v2315_v31 = vld [vmem:[#allocation8 + $0x20] sm:$0xff]  ;;  %v2324_v34 = vld [vmem:[#allocation8 + $0x68] sm:$0xff] }
  0xef   :  { %1610 = vmatpush.bf16.msra.mxu1 %v2325_v30  ;;  %v2314_v36 = vld [vmem:[#allocation8 + $0x18] sm:$0xff] }
  0xf0   :  { %v1092_v41 = vrot.slane %v1091_v37, 2  ;;  %v1285_v42 = vsel %vm1284_vm1, %v1088_v39, %v1283_v5  ;;  %v990_v52 = vmax.f32 %v646_v40, 0.0  ;;  %v987_v63 = vmax.f32 %v742_v38, 0.0  ;;  %v2313_v38 = vld [vmem:[#allocation8 + $0x10] sm:$0xff]  ;;  %v2322_v39 = vld [vmem:[#allocation8 + $0x58] sm:$0xff] }
  0xf2   :  { %v1093_v44 = vadd.f32 %v1092_v41, %v1091_v37  ;;  %v1110_v45 = vadd.f32 %v990_v52, %v986_v43  ;;  %v2323_v37 = vld [vmem:[#allocation8 + $0x60] sm:$0xff]  ;;  %v2312_v43 = vld [vmem:[#allocation8 + $0x8] sm:$0xff] }
  0xf3   :  { %1611 = vmatpush.bf16.msra.mxu1 %v2324_v34 }
  0xf4   :  { %v1094_v53 = vrot.slane %v1093_v44, 1  ;;  %v694_v50 = vpop.f32.mrf.mxu2  ;;  %v1111_v51 = vrot.slane %v1110_v45, 4  ;;  %v2633_v55 = vpop.f32.mrf.mxu0 }
  0xf5   :  { %v743_v54 = vpop.f32.mrf.mxu3  ;;  %v2635_v60 = vpop.f32.mrf.mxu1 }
  0xf6   :  { %v1095_v58 = vadd.f32 %v1094_v53, %v1093_v44  ;;  %v744_v59 = vadd.f32 %v743_v54, %v694_v50  ;;  %v1112_v61 = vadd.f32 %v1111_v51, %v1110_v45  ;;  %v649_v40 = vadd.f32 %v2635_v60, %v2633_v55  ;;  %v2321_v54 = vld [vmem:[#allocation8 + $0x50] sm:$0xff] }
  0xf7   :  { %794 = vmatmul.bf16.gmra.mxu0 %v2582_v6  ;;  %1612 = vmatpush.bf16.msra.mxu1 %v2323_v37 }
  0xf8   :  { %v1297_v62 = vsel %vm1284_vm1, %v1095_v58, %v1296_v23  ;;  %v991_v0 = vmax.f32 %v744_v59, 0.0  ;;  %v1113_v1 = vrot.slane %v1112_v61, 2  ;;  %843 = vmatmul.bf16.gmra.mxu1 %v2584_v7  ;;  %v2311_v59 = vld [vmem:[#allocation8] sm:$0xff] }
  0xf9   :  { %892 = vmatmul.bf16.gmra.mxu2 %v2582_v6 }
  0xfa   :  { %v1117_v2 = vadd.f32 %v991_v0, %v987_v63  ;;  %941 = vmatmul.bf16.gmra.mxu3 %v2584_v7  ;;  %v1114_v3 = vadd.f32 %v1113_v1, %v1112_v61  ;;  %v2318_v7 = vld [vmem:[#allocation8 + $0x38] sm:$0xff]  ;;  %v2320_v1 = vld [vmem:[#allocation8 + $0x48] sm:$0xff] }
  0xfb   :  { %1596 = vmatpush.bf16.msra.mxu0 %v2318_v7  ;;  %1613 = vmatpush.bf16.msra.mxu1 %v2322_v39 }
  0xfc   :  { %v1118_v4 = vrot.slane %v1117_v2, 4  ;;  %v2642_v32 = vpop.f32.mrf.mxu2  ;;  %v1115_v5 = vrot.slane %v1114_v3, 1  ;;  %v601_v33 = vpop.f32.mrf.mxu0 }
  0xfd   :  { %v2644_v8 = vpop.f32.mrf.mxu3  ;;  %v650_v10 = vpop.f32.mrf.mxu1 }
  0xfe   :  { %v1119_v9 = vadd.f32 %v1118_v4, %v1117_v2  ;;  %v1116_v11 = vadd.f32 %v1115_v5, %v1114_v3  ;;  %v651_v15 = vadd.f32 %v650_v10, %v601_v33  ;;  %v747_v2 = vadd.f32 %v2644_v8, %v2642_v32 }
  0xff   :  { %1597 = vmatpush.bf16.msra.mxu0 %v2317_v21  ;;  %1614 = vmatpush.bf16.msra.mxu1 %v2321_v54 }
 0x100   :  { %v1120_v12 = vrot.slane %v1119_v9, 2  ;;  %v2647_v13 = vsel %vm1286_vm2, %v1116_v11, %v1285_v42  ;;  %v998_v52 = vmax.f32 %v651_v15, 0.0 }
 0x102   :  { %v1121_v6 = vadd.f32 %v1120_v12, %v1119_v9 }
 0x103   :  { %1598 = vmatpush.bf16.msra.mxu0 %v2316_v24  ;;  %1615 = vmatpush.bf16.msra.mxu1 %v2320_v1 }
 0x104   :  { %v1122_v16 = vrot.slane %v1121_v6, 1  ;;  %v2649_v17 = vpop.f32.mrf.mxu2  ;;  %v604_v49 = vpop.f32.mrf.mxu0 }
 0x105   :  { %v748_v46 = vpop.f32.mrf.mxu3  ;;  %v653_v19 = vpop.f32.mrf.mxu1 }
 0x106   :  { %v1123_v18 = vadd.f32 %v1122_v16, %v1121_v6  ;;  %v654_v44 = vadd.f32 %v653_v19, %v604_v49  ;;  %v749_v55 = vadd.f32 %v748_v46, %v2649_v17  ;;  %v2319_v46 = vld [vmem:[#allocation8 + $0x40] sm:$0xff]  ;;  %v995_v49 = vmax.f32 %v747_v2, 0.0 }
 0x107   :  { %799 = vmatmul.bf16.gmra.mxu0 %v2590_v26  ;;  %1616 = vmatpush.bf16.msra.mxu1 %v2319_v46 }
 0x108   :  { %v2652_v20 = vsel %vm1286_vm2, %v1123_v18, %v1297_v62  ;;  %848 = vmatmul.bf16.gmra.mxu1 %v2592_v27  ;;  %1599 = vmatpush.bf16.msra.mxu0 %v2315_v31  ;;  %v1002_v60 = vmax.f32 %v654_v44, 0.0  ;;  %v999_v10 = vmax.f32 %v749_v55, 0.0 }
 0x109   :  { %897 = vmatmul.bf16.gmra.mxu2 %v2590_v26 }
 0x10a   :  { %946 = vmatmul.bf16.gmra.mxu3 %v2592_v27  ;;  %v1145_v8 = vadd.f32 %v999_v10, %v995_v49 }
 0x10c   :  { %v702_v23 = vpop.f32.mrf.mxu2  ;;  %v606_v28 = vpop.f32.mrf.mxu0  ;;  %1600 = vmatpush.bf16.msra.mxu0 %v2314_v36  ;;  %v1146_v34 = vrot.slane %v1145_v8, 4 }
 0x10d   :  { %v751_v25 = vpop.f32.mrf.mxu3  ;;  %v655_v29 = vpop.f32.mrf.mxu1 }
 0x10e   :  { %v656_v41 = vadd.f32 %v655_v29, %v606_v28  ;;  %v752_v4 = vadd.f32 %v751_v25, %v702_v23 }
 0x110   :  { %1601 = vmatpush.bf16.msra.mxu0 %v2313_v38  ;;  %v1006_v58 = vmax.f32 %v656_v41, 0.0  ;;  %v1003_v19 = vmax.f32 %v752_v4, 0.0 }
 0x112   :  { %v1166_v3 = vadd.f32 %v1006_v58, %v1002_v60  ;;  %v2334_v60 = vld [vmem:[#allocation8 + $0xb8] sm:$0xff] }
 0x113   :  { %1622 = vmatpush.bf16.msra.mxu2 %v2334_v60 }
 0x114   :  { %v704_v35 = vpop.f32.mrf.mxu2  ;;  %v609_v14 = vpop.f32.mrf.mxu0  ;;  %1602 = vmatpush.bf16.msra.mxu0 %v2312_v43  ;;  %v1167_v18 = vrot.slane %v1166_v3, 4 }
 0x115   :  { %v753_v26 = vpop.f32.mrf.mxu3  ;;  %v658_v27 = vpop.f32.mrf.mxu1 }
 0x116   :  { %v659_v50 = vadd.f32 %v658_v27, %v609_v14  ;;  %v754_v63 = vadd.f32 %v753_v26, %v704_v35  ;;  %v1168_v25 = vadd.f32 %v1167_v18, %v1166_v3 }
 0x117   :  { %804 = vmatmul.bf16.gmra.mxu0 %v2598_v47 }
 0x118   :  { %853 = vmatmul.bf16.gmra.mxu1 %v2600_v48  ;;  %v1010_v0 = vmax.f32 %v659_v50, 0.0  ;;  %1603 = vmatpush.bf16.msra.mxu0 %v2311_v59  ;;  %v1007_v16 = vmax.f32 %v754_v63, 0.0  ;;  %v1169_v37 = vrot.slane %v1168_v25, 2 }
 0x119   :  { %902 = vmatmul.bf16.gmra.mxu2 %v2598_v47  ;;  %v994_v47 = vmax.f32 %v649_v40, 0.0 }
 0x11a   :  { %951 = vmatmul.bf16.gmra.mxu3 %v2600_v48  ;;  %v1173_v24 = vadd.f32 %v1007_v16, %v1003_v19  ;;  %v1170_v43 = vadd.f32 %v1169_v37, %v1168_v25 }
 0x11b   :  { %v1138_v61 = vadd.f32 %v998_v52, %v994_v47 }
 0x11c   :  { %v707_v42 = vpop.f32.mrf.mxu2  ;;  %v611_v53 = vpop.f32.mrf.mxu0  ;;  %v1174_v14 = vrot.slane %v1173_v24, 4  ;;  %v1171_v63 = vrot.slane %v1170_v43, 1 }
 0x11d   :  { %v756_v45 = vpop.f32.mrf.mxu3  ;;  %v660_v51 = vpop.f32.mrf.mxu1  ;;  %v1139_v9 = vrot.slane %v1138_v61, 4 }
 0x11e   :  { %v661_v48 = vadd.f32 %v660_v51, %v611_v53  ;;  %v757_v11 = vadd.f32 %v756_v45, %v707_v42 }
 0x11f   :  { %v1140_v32 = vadd.f32 %v1139_v9, %v1138_v61 }
 0x120   :  { %v1014_v62 = vmax.f32 %v661_v48, 0.0  ;;  %v1011_v23 = vmax.f32 %v757_v11, 0.0 }
 0x121   :  { %v1141_v31 = vrot.slane %v1140_v32, 2 }
 0x122   :  { %v1194_v5 = vadd.f32 %v1014_v62, %v1010_v0  ;;  %v2342_v62 = vld [vmem:[#allocation8 + $0xf8] sm:$0xff] }
 0x123   :  { %v1142_v40 = vadd.f32 %v1141_v31, %v1140_v32  ;;  %1635 = vmatpush.bf16.msra.mxu3 %v2342_v62 }
 0x124   :  { %v709_v33 = vpop.f32.mrf.mxu2  ;;  %v614_v6 = vpop.f32.mrf.mxu0  ;;  %v1195_v21 = vrot.slane %v1194_v5, 4 }
 0x125   :  { %v758_v12 = vpop.f32.mrf.mxu3  ;;  %v663_v7 = vpop.f32.mrf.mxu1  ;;  %v1143_v51 = vrot.slane %v1142_v40, 1 }
 0x126   :  { %v759_v17 = vadd.f32 %v758_v12, %v709_v33  ;;  %v1196_v29 = vadd.f32 %v1195_v21, %v1194_v5  ;;  %v664_v35 = vadd.f32 %v663_v7, %v614_v6  ;;  %v1172_v6 = vadd.f32 %v1171_v63, %v1170_v43 }
 0x127   :  { %809 = vmatmul.bf16.gmra.mxu0 %v2606_v56  ;;  %v1144_v33 = vadd.f32 %v1143_v51, %v1142_v40 }
 0x128   :  { %v1015_v22 = vmax.f32 %v759_v17, 0.0  ;;  %858 = vmatmul.bf16.gmra.mxu1 %v2608_v57  ;;  %v1197_v39 = vrot.slane %v1196_v29, 2  ;;  %v1018_v41 = vmax.f32 %v664_v35, 0.0 }
 0x129   :  { %907 = vmatmul.bf16.gmra.mxu2 %v2606_v56  ;;  %v1147_v56 = vadd.f32 %v1146_v34, %v1145_v8  ;;  %v1289_v18 = vsel %vm1288_vm3, %v1144_v33, %v2647_v13 }
 0x12a   :  { %956 = vmatmul.bf16.gmra.mxu3 %v2608_v57  ;;  %v1201_v28 = vadd.f32 %v1015_v22, %v1011_v23  ;;  %v1175_v57 = vadd.f32 %v1174_v14, %v1173_v24  ;;  %v1198_v45 = vadd.f32 %v1197_v39, %v1196_v29 }
 0x12b   :  { %v1148_v54 = vrot.slane %v1147_v56, 2 }
 0x12c   :  { %v712_v30 = vpop.f32.mrf.mxu2  ;;  %v616_v26 = vpop.f32.mrf.mxu0  ;;  %v1202_v38 = vrot.slane %v1201_v28, 4  ;;  %v1176_v59 = vrot.slane %v1175_v57, 2  ;;  %v1199_v3 = vrot.slane %v1198_v45, 1 }
 0x12d   :  { %v761_v36 = vpop.f32.mrf.mxu3  ;;  %v665_v27 = vpop.f32.mrf.mxu1  ;;  %v1149_v9 = vadd.f32 %v1148_v54, %v1147_v56 }
 0x12e   :  { %v666_v15 = vadd.f32 %v665_v27, %v616_v26  ;;  %v1203_v52 = vadd.f32 %v1202_v38, %v1201_v28  ;;  %v762_v53 = vadd.f32 %v761_v36, %v712_v30  ;;  %v1177_v11 = vadd.f32 %v1176_v59, %v1175_v57 }
 0x12f   :  { %v1200_v7 = vadd.f32 %v1199_v3, %v1198_v45  ;;  %v1150_v19 = vrot.slane %v1149_v9, 1  ;;  %v1291_v28 = vsel %vm1290_vm4, %v1172_v6, %v1289_v18 }
 0x130   :  { %v1022_v42 = vmax.f32 %v666_v15, 0.0  ;;  %v1204_v0 = vrot.slane %v1203_v52, 2  ;;  %v1019_v4 = vmax.f32 %v762_v53, 0.0  ;;  %v1178_v8 = vrot.slane %v1177_v11, 1 }
 0x131   :  { %v1293_v34 = vsel %vm1292_vm5, %v1200_v7, %v1291_v28  ;;  %v1151_v36 = vadd.f32 %v1150_v19, %v1149_v9 }
 0x132   :  { %v1222_v44 = vadd.f32 %v1022_v42, %v1018_v41  ;;  %v1205_v16 = vadd.f32 %v1204_v0, %v1203_v52  ;;  %v1179_v27 = vadd.f32 %v1178_v8, %v1177_v11 }
 0x133   :  { %v1299_v41 = vsel %vm1288_vm3, %v1151_v36, %v2652_v20 }
 0x134   :  { %v714_v50 = vpop.f32.mrf.mxu2  ;;  %v1223_v47 = vrot.slane %v1222_v44, 4  ;;  %v775_v48 = vpop.f32.mrf.mxu0  ;;  %v1206_v29 = vrot.slane %v1205_v16, 1  ;;  %v1300_v43 = vsel %vm1290_vm4, %v1179_v27, %v1299_v41 }
 0x135   :  { %v763_v58 = vpop.f32.mrf.mxu3  ;;  %v824_v55 = vpop.f32.mrf.mxu1 }
 0x136   :  { %v764_v61 = vadd.f32 %v763_v58, %v714_v50  ;;  %v1224_v1 = vadd.f32 %v1223_v47, %v1222_v44  ;;  %v825_v2 = vadd.f32 %v824_v55, %v775_v48  ;;  %v1207_v15 = vadd.f32 %v1206_v29, %v1205_v16  ;;  %v2333_v58 = vld [vmem:[#allocation8 + $0xb0] sm:$0xff] }
 0x137   :  { %v2341_v48 = vld [vmem:[#allocation8 + $0xf0] sm:$0xff]  ;;  %1623 = vmatpush.bf16.msra.mxu2 %v2333_v58 }
 0x138   :  { %v1023_v5 = vmax.f32 %v764_v61, 0.0  ;;  %v1225_v10 = vrot.slane %v1224_v1, 2  ;;  %v964_v13 = vmax.f32 %v825_v2, 0.0  ;;  %v1301_v53 = vsel %vm1292_vm5, %v1207_v15, %v1300_v43  ;;  %1636 = vmatpush.bf16.msra.mxu3 %v2341_v48 }
 0x13a   :  { %v1229_v12 = vadd.f32 %v1023_v5, %v1019_v4  ;;  %v1226_v17 = vadd.f32 %v1225_v10, %v1224_v1 }
 0x13c   :  { %v1230_v46 = vrot.slane %v1229_v12, 4  ;;  %v873_v49 = vpop.f32.mrf.mxu2  ;;  %v1227_v21 = vrot.slane %v1226_v17, 1  ;;  %v777_v32 = vpop.f32.mrf.mxu0 }
 0x13d   :  { %v922_v22 = vpop.f32.mrf.mxu3  ;;  %v826_v25 = vpop.f32.mrf.mxu1 }
 0x13e   :  { %v1231_v23 = vadd.f32 %v1230_v46, %v1229_v12  ;;  %v923_v24 = vadd.f32 %v922_v22, %v873_v49  ;;  %v1228_v30 = vadd.f32 %v1227_v21, %v1226_v17  ;;  %v827_v31 = vadd.f32 %v826_v25, %v777_v32  ;;  %v2332_v22 = vld [vmem:[#allocation8 + $0xa8] sm:$0xff] }
 0x13f   :  { %v2340_v32 = vld [vmem:[#allocation8 + $0xe8] sm:$0xff]  ;;  %1624 = vmatpush.bf16.msra.mxu2 %v2332_v22 }
 0x140   :  { %v1232_v35 = vrot.slane %v1231_v23, 2  ;;  %v968_v26 = vmax.f32 %v827_v31, 0.0  ;;  %v1295_v14 = vsel %vm1294_vm6, %v1228_v30, %v1293_v34  ;;  %v965_v51 = vmax.f32 %v923_v24, 0.0  ;;  %1637 = vmatpush.bf16.msra.mxu3 %v2340_v32 }
 0x141   :  { %v1332_v38 = vpack.c.bf16 %v1295_v14, %v1295_v14 }
 0x142   :  { %v1233_v37 = vadd.f32 %v1232_v35, %v1231_v23  ;;  %v1040_v39 = vadd.f32 %v968_v26, %v964_v13 }
 0x143   :  { %1604 = vmatmul.bf16.vlgmr.msra.gmra.mxu0 %v1332_v38 }
 0x144   :  { %v1234_v40 = vrot.slane %v1233_v37, 1  ;;  %v875_v56 = vpop.f32.mrf.mxu2  ;;  %v780_v57 = vpop.f32.mrf.mxu0  ;;  %v1041_v20 = vrot.slane %v1040_v39, 4 }
 0x145   :  { %v924_v42 = vpop.f32.mrf.mxu3  ;;  %v829_v45 = vpop.f32.mrf.mxu1 }
 0x146   :  { %v1235_v52 = vadd.f32 %v1234_v40, %v1233_v37  ;;  %v925_v44 = vadd.f32 %v924_v42, %v875_v56  ;;  %v830_v50 = vadd.f32 %v829_v45, %v780_v57  ;;  %v1042_v1 = vadd.f32 %v1041_v20, %v1040_v39 }
 0x148   :  { %v969_v54 = vmax.f32 %v925_v44, 0.0  ;;  %v1302_v47 = vsel %vm1294_vm6, %v1235_v52, %v1301_v53  ;;  %v972_v3 = vmax.f32 %v830_v50, 0.0  ;;  %v1043_v33 = vrot.slane %v1042_v1, 2 }
 0x149   :  { %v1333_v59 = vpack.c.bf16 %v1302_v47, %v1302_v47 }
 0x14a   :  { %v1047_v61 = vadd.f32 %v969_v54, %v965_v51  ;;  %v1044_v46 = vadd.f32 %v1043_v33, %v1042_v1 }
 0x14b   :  { %1617 = vmatmul.bf16.vlgmr.msra.gmra.mxu1 %v1333_v59 }
 0x14c   :  { %v878_v55 = vpop.f32.mrf.mxu2  ;;  %v782_v62 = vpop.f32.mrf.mxu0  ;;  %v1048_v5 = vrot.slane %v1047_v61, 4  ;;  %v1045_v25 = vrot.slane %v1044_v46, 1 }
 0x14d   :  { %v927_v60 = vpop.f32.mrf.mxu3  ;;  %v831_v0 = vpop.f32.mrf.mxu1 }
 0x14e   :  { %v928_v63 = vadd.f32 %v927_v60, %v878_v55  ;;  %v832_v2 = vadd.f32 %v831_v0, %v782_v62  ;;  %v1049_v16 = vadd.f32 %v1048_v5, %v1047_v61  ;;  %v1046_v27 = vadd.f32 %v1045_v25, %v1044_v46  ;;  %v2331_v55 = vld [vmem:[#allocation8 + $0xa0] sm:$0xff] }
 0x14f   :  { %v2339_v60 = vld [vmem:[#allocation8 + $0xe0] sm:$0xff]  ;;  %1625 = vmatpush.bf16.msra.mxu2 %v2331_v55 }
 0x150   :  { %v976_v4 = vmax.f32 %v832_v2, 0.0  ;;  %v973_v19 = vmax.f32 %v928_v63, 0.0  ;;  %v1050_v23 = vrot.slane %v1049_v16, 2  ;;  %1638 = vmatpush.bf16.msra.mxu3 %v2339_v60 }
 0x152   :  { %v1068_v9 = vadd.f32 %v976_v4, %v972_v3  ;;  %v1051_v36 = vadd.f32 %v1050_v23, %v1049_v16 }
 0x154   :  { %v880_v10 = vpop.f32.mrf.mxu2  ;;  %v1069_v11 = vrot.slane %v1068_v9, 4  ;;  %v785_v6 = vpop.f32.mrf.mxu0  ;;  %v1052_v41 = vrot.slane %v1051_v36, 1 }
 0x155   :  { %v929_v12 = vpop.f32.mrf.mxu3  ;;  %v834_v7 = vpop.f32.mrf.mxu1 }
 0x156   :  { %v930_v17 = vadd.f32 %v929_v12, %v880_v10  ;;  %v1070_v49 = vadd.f32 %v1069_v11, %v1068_v9  ;;  %v835_v18 = vadd.f32 %v834_v7, %v785_v6  ;;  %v1053_v50 = vadd.f32 %v1052_v41, %v1051_v36 }
 0x158   :  { %v977_v21 = vmax.f32 %v930_v17, 0.0  ;;  %v1071_v8 = vrot.slane %v1070_v49, 2  ;;  %v980_v40 = vmax.f32 %v835_v18, 0.0 }
 0x15a   :  { %v1075_v24 = vadd.f32 %v977_v21, %v973_v19  ;;  %v1072_v28 = vadd.f32 %v1071_v8, %v1070_v49 }
 0x15c   :  { %v1076_v29 = vrot.slane %v1075_v24, 4  ;;  %v883_v30 = vpop.f32.mrf.mxu2  ;;  %v1073_v31 = vrot.slane %v1072_v28, 1  ;;  %v787_v35 = vpop.f32.mrf.mxu0 }
 0x15d   :  { %v932_v34 = vpop.f32.mrf.mxu3  ;;  %v836_v14 = vpop.f32.mrf.mxu1 }
 0x15e   :  { %v1077_v13 = vadd.f32 %v1076_v29, %v1075_v24  ;;  %v933_v26 = vadd.f32 %v932_v34, %v883_v30  ;;  %v1074_v37 = vadd.f32 %v1073_v31, %v1072_v28  ;;  %v837_v38 = vadd.f32 %v836_v14, %v787_v35  ;;  %v2330_v31 = vld [vmem:[#allocation8 + $0x98] sm:$0xff] }
 0x15f   :  { %v2338_v34 = vld [vmem:[#allocation8 + $0xd8] sm:$0xff]  ;;  %1626 = vmatpush.bf16.msra.mxu2 %v2330_v31 }
 0x160   :  { %v1078_v15 = vrot.slane %v1077_v13, 2  ;;  %v1303_v39 = vsel %vm1282_vm0, %v1074_v37, %v1046_v27  ;;  %v984_v56 = vmax.f32 %v837_v38, 0.0  ;;  %v981_v61 = vmax.f32 %v933_v26, 0.0  ;;  %1639 = vmatpush.bf16.msra.mxu3 %v2338_v34 }
 0x162   :  { %v1079_v42 = vadd.f32 %v1078_v15, %v1077_v13  ;;  %v1096_v57 = vadd.f32 %v984_v56, %v980_v40 }
 0x164   :  { %v1080_v43 = vrot.slane %v1079_v42, 1  ;;  %v885_v52 = vpop.f32.mrf.mxu2  ;;  %v1097_v44 = vrot.slane %v1096_v57, 4  ;;  %v790_v53 = vpop.f32.mrf.mxu0 }
 0x165   :  { %v934_v45 = vpop.f32.mrf.mxu3  ;;  %v839_v47 = vpop.f32.mrf.mxu1 }
 0x166   :  { %v1081_v51 = vadd.f32 %v1080_v43, %v1079_v42  ;;  %v935_v54 = vadd.f32 %v934_v45, %v885_v52  ;;  %v1098_v58 = vadd.f32 %v1097_v44, %v1096_v57  ;;  %v840_v48 = vadd.f32 %v839_v47, %v790_v53 }
 0x168   :  { %v1310_v59 = vsel %vm1282_vm0, %v1081_v51, %v1053_v50  ;;  %v985_v20 = vmax.f32 %v935_v54, 0.0  ;;  %v1099_v62 = vrot.slane %v1098_v58, 2  ;;  %v988_v17 = vmax.f32 %v840_v48, 0.0  ;;  %v2329_v51 = vld [vmem:[#allocation8 + $0x90] sm:$0xff] }
 0x169   :  { %v2337_v54 = vld [vmem:[#allocation8 + $0xd0] sm:$0xff]  ;;  %1627 = vmatpush.bf16.msra.mxu2 %v2329_v51 }
 0x16a   :  { %v1103_v63 = vadd.f32 %v985_v20, %v981_v61  ;;  %v1100_v0 = vadd.f32 %v1099_v62, %v1098_v58  ;;  %1640 = vmatpush.bf16.msra.mxu3 %v2337_v54  ;;  %v2328_v62 = vld [vmem:[#allocation8 + $0x88] sm:$0xff] }
 0x16c   :  { %v1104_v1 = vrot.slane %v1103_v63, 4  ;;  %v888_v2 = vpop.f32.mrf.mxu2  ;;  %v1101_v3 = vrot.slane %v1100_v0, 1  ;;  %v792_v5 = vpop.f32.mrf.mxu0 }
 0x16d   :  { %v937_v4 = vpop.f32.mrf.mxu3  ;;  %v841_v10 = vpop.f32.mrf.mxu1  ;;  %1628 = vmatpush.bf16.msra.mxu2 %v2328_v62 }
 0x16e   :  { %v1105_v33 = vadd.f32 %v1104_v1, %v1103_v63  ;;  %v938_v9 = vadd.f32 %v937_v4, %v888_v2  ;;  %v1102_v11 = vadd.f32 %v1101_v3, %v1100_v0  ;;  %v842_v12 = vadd.f32 %v841_v10, %v792_v5  ;;  %v2336_v63 = vld [vmem:[#allocation8 + $0xc8] sm:$0xff] }
 0x16f   :  { %1641 = vmatpush.bf16.msra.mxu3 %v2336_v63 }
 0x170   :  { %v1106_v6 = vrot.slane %v1105_v33, 2  ;;  %v1304_v16 = vsel %vm1284_vm1, %v1102_v11, %v1303_v39  ;;  %v992_v7 = vmax.f32 %v842_v12, 0.0  ;;  %v989_v29 = vmax.f32 %v938_v9, 0.0 }
 0x172   :  { %v1107_v46 = vadd.f32 %v1106_v6, %v1105_v33  ;;  %v1124_v49 = vadd.f32 %v992_v7, %v988_v17  ;;  %v2327_v17 = vld [vmem:[#allocation8 + $0x80] sm:$0xff] }
 0x173   :  { %1629 = vmatpush.bf16.msra.mxu2 %v2327_v17 }
 0x174   :  { %v1108_v18 = vrot.slane %v1107_v46, 1  ;;  %v890_v19 = vpop.f32.mrf.mxu2  ;;  %v1125_v21 = vrot.slane %v1124_v49, 4  ;;  %v795_v32 = vpop.f32.mrf.mxu0 }
 0x175   :  { %v939_v22 = vpop.f32.mrf.mxu3  ;;  %v844_v24 = vpop.f32.mrf.mxu1 }
 0x176   :  { %v1109_v8 = vadd.f32 %v1108_v18, %v1107_v46  ;;  %v940_v23 = vadd.f32 %v939_v22, %v890_v19  ;;  %v1126_v25 = vadd.f32 %v1125_v21, %v1124_v49  ;;  %v845_v2 = vadd.f32 %v844_v24, %v795_v32 }
 0x178   :  { %v1311_v28 = vsel %vm1284_vm1, %v1109_v8, %v1310_v59  ;;  %v993_v30 = vmax.f32 %v940_v23, 0.0  ;;  %v1127_v35 = vrot.slane %v1126_v25, 2 }
 0x17a   :  { %v1131_v36 = vadd.f32 %v993_v30, %v989_v29  ;;  %v1128_v13 = vadd.f32 %v1127_v35, %v1126_v25 }
 0x17c   :  { %v1132_v26 = vrot.slane %v1131_v36, 4  ;;  %v893_v14 = vpop.f32.mrf.mxu2  ;;  %v1129_v27 = vrot.slane %v1128_v13, 1  ;;  %v797_v38 = vpop.f32.mrf.mxu0 }
 0x17d   :  { %v942_v37 = vpop.f32.mrf.mxu3  ;;  %v846_v39 = vpop.f32.mrf.mxu1 }
 0x17e   :  { %v1133_v15 = vadd.f32 %v1132_v26, %v1131_v36  ;;  %v1130_v40 = vadd.f32 %v1129_v27, %v1128_v13  ;;  %v847_v0 = vadd.f32 %v846_v39, %v797_v38  ;;  %v943_v22 = vadd.f32 %v942_v37, %v893_v14  ;;  %v2335_v13 = vld [vmem:[#allocation8 + $0xc0] sm:$0xff] }
 0x17f   :  { %1642 = vmatpush.bf16.msra.mxu3 %v2335_v13 }
 0x180   :  { %v1134_v56 = vrot.slane %v1133_v15, 2  ;;  %v2686_v41 = vsel %vm1286_vm2, %v1130_v40, %v1304_v16  ;;  %v1000_v9 = vmax.f32 %v847_v0, 0.0  ;;  %v996_v16 = vmax.f32 %v845_v2, 0.0  ;;  %v2349_v2 = vld [vmem:[#allocation9 + $0x30] sm:$0xff] }
 0x181   :  { %v997_v26 = vmax.f32 %v943_v22, 0.0 }
 0x182   :  { %v1135_v42 = vadd.f32 %v1134_v56, %v1133_v15  ;;  %v1152_v18 = vadd.f32 %v1000_v9, %v996_v16 }
 0x184   :  { %v1136_v57 = vrot.slane %v1135_v42, 1  ;;  %v895_v43 = vpop.f32.mrf.mxu2  ;;  %v800_v44 = vpop.f32.mrf.mxu0  ;;  %v1153_v31 = vrot.slane %v1152_v18, 4 }
 0x185   :  { %v944_v52 = vpop.f32.mrf.mxu3  ;;  %v849_v53 = vpop.f32.mrf.mxu1 }
 0x186   :  { %v1137_v45 = vadd.f32 %v1136_v57, %v1135_v42  ;;  %v850_v4 = vadd.f32 %v849_v53, %v800_v44  ;;  %v945_v7 = vadd.f32 %v944_v52, %v895_v43  ;;  %v1154_v40 = vadd.f32 %v1153_v31, %v1152_v18 }
 0x188   :  { %v2689_v50 = vsel %vm1286_vm2, %v1137_v45, %v1311_v28  ;;  %v1004_v46 = vmax.f32 %v850_v4, 0.0  ;;  %v1001_v25 = vmax.f32 %v945_v7, 0.0  ;;  %v1155_v54 = vrot.slane %v1154_v40, 2 }
 0x18a   :  { %v1159_v14 = vadd.f32 %v1001_v25, %v997_v26  ;;  %v1156_v0 = vadd.f32 %v1155_v54, %v1154_v40 }
 0x18c   :  { %v898_v47 = vpop.f32.mrf.mxu2  ;;  %v802_v48 = vpop.f32.mrf.mxu0  ;;  %v1160_v44 = vrot.slane %v1159_v14, 4  ;;  %v1157_v16 = vrot.slane %v1156_v0, 1 }
 0x18d   :  { %v947_v58 = vpop.f32.mrf.mxu3  ;;  %v851_v59 = vpop.f32.mrf.mxu1 }
 0x18e   :  { %v852_v1 = vadd.f32 %v851_v59, %v802_v48  ;;  %v948_v8 = vadd.f32 %v947_v58, %v898_v47 }
 0x190   :  { %v1008_v12 = vmax.f32 %v852_v1, 0.0  ;;  %v1005_v38 = vmax.f32 %v948_v8, 0.0 }
 0x192   :  { %v1180_v32 = vadd.f32 %v1008_v12, %v1004_v46  ;;  %v2348_v46 = vld [vmem:[#allocation9 + $0x28] sm:$0xff] }
 0x194   :  { %v900_v61 = vpop.f32.mrf.mxu2  ;;  %v805_v55 = vpop.f32.mrf.mxu0  ;;  %v1181_v27 = vrot.slane %v1180_v32, 4 }
 0x195   :  { %v949_v20 = vpop.f32.mrf.mxu3  ;;  %v854_v60 = vpop.f32.mrf.mxu1 }
 0x196   :  { %v855_v10 = vadd.f32 %v854_v60, %v805_v55  ;;  %v950_v19 = vadd.f32 %v949_v20, %v900_v61  ;;  %v1182_v42 = vadd.f32 %v1181_v27, %v1180_v32  ;;  %v2350_v55 = vld [vmem:[#allocation9 + $0x38] sm:$0xff]  ;;  %v1161_v60 = vadd.f32 %v1160_v44, %v1159_v14 }
 0x197   :  { %1718 = vmatpush.bf16.msrb.mxu0 %v2350_v55 }
 0x198   :  { %v1012_v21 = vmax.f32 %v855_v10, 0.0  ;;  %v1009_v34 = vmax.f32 %v950_v19, 0.0  ;;  %v1183_v48 = vrot.slane %v1182_v42, 2 }
 0x19a   :  { %v1187_v56 = vadd.f32 %v1009_v34, %v1005_v38 }
 0x19b   :  { %1719 = vmatpush.bf16.msrb.mxu0 %v2349_v2  ;;  %v2344_v2 = vld [vmem:[#allocation9 + $0x8] sm:$0xff] }
 0x19c   :  { %v903_v3 = vpop.f32.mrf.mxu2  ;;  %v807_v33 = vpop.f32.mrf.mxu0  ;;  %v1188_v47 = vrot.slane %v1187_v56, 4 }
 0x19d   :  { %v952_v5 = vpop.f32.mrf.mxu3  ;;  %v856_v11 = vpop.f32.mrf.mxu1 }
 0x19e   :  { %v857_v6 = vadd.f32 %v856_v11, %v807_v33  ;;  %v953_v28 = vadd.f32 %v952_v5, %v903_v3  ;;  %v1189_v1 = vadd.f32 %v1188_v47, %v1187_v56  ;;  %v1184_v3 = vadd.f32 %v1183_v48, %v1182_v42 }
 0x19f   :  { %v1162_v11 = vrot.slane %v1161_v60, 2  ;;  %1720 = vmatpush.bf16.msrb.mxu0 %v2348_v46 }
 0x1a0   :  { %v1016_v49 = vmax.f32 %v857_v6, 0.0  ;;  %v1013_v37 = vmax.f32 %v953_v28, 0.0  ;;  %v1190_v17 = vrot.slane %v1189_v1, 2 }
 0x1a1   :  { %v1163_v8 = vadd.f32 %v1162_v11, %v1161_v60 }
 0x1a2   :  { %v1208_v23 = vadd.f32 %v1016_v49, %v1012_v21  ;;  %v1185_v49 = vrot.slane %v1184_v3, 1  ;;  %v1191_v25 = vadd.f32 %v1190_v17, %v1189_v1  ;;  %v2345_v1 = vld [vmem:[#allocation9 + $0x10] sm:$0xff] }
 0x1a3   :  { %v1164_v13 = vrot.slane %v1163_v8, 1 }
 0x1a4   :  { %v905_v24 = vpop.f32.mrf.mxu2  ;;  %v810_v30 = vpop.f32.mrf.mxu0  ;;  %v1209_v15 = vrot.slane %v1208_v23, 4  ;;  %v1192_v38 = vrot.slane %v1191_v25, 1 }
 0x1a5   :  { %v954_v29 = vpop.f32.mrf.mxu3  ;;  %v859_v36 = vpop.f32.mrf.mxu1 }
 0x1a6   :  { %v955_v35 = vadd.f32 %v954_v29, %v905_v24  ;;  %v1210_v43 = vadd.f32 %v1209_v15, %v1208_v23  ;;  %v860_v45 = vadd.f32 %v859_v36, %v810_v30  ;;  %v1158_v24 = vadd.f32 %v1157_v16, %v1156_v0  ;;  %v2347_v29 = vld [vmem:[#allocation9 + $0x20] sm:$0xff] }
 0x1a7   :  { %v1186_v30 = vadd.f32 %v1185_v49, %v1184_v3  ;;  %1721 = vmatpush.bf16.msrb.mxu0 %v2347_v29  ;;  %v1193_v44 = vadd.f32 %v1192_v38, %v1191_v25  ;;  %v2343_v3 = vld [vmem:[#allocation9] sm:$0xff] }
 0x1a8   :  { %v1017_v39 = vmax.f32 %v955_v35, 0.0  ;;  %v1211_v20 = vrot.slane %v1210_v43, 2  ;;  %v1020_v62 = vmax.f32 %v860_v45, 0.0  ;;  %v1306_v27 = vsel %vm1288_vm3, %v1158_v24, %v2686_v41 }
 0x1a9   :  { %v1307_v14 = vsel %vm1290_vm4, %v1186_v30, %v1306_v27 }
 0x1aa   :  { %v1215_v57 = vadd.f32 %v1017_v39, %v1013_v37  ;;  %v1212_v33 = vadd.f32 %v1211_v20, %v1210_v43  ;;  %v2346_v39 = vld [vmem:[#allocation9 + $0x18] sm:$0xff] }
 0x1ab   :  { %1722 = vmatpush.bf16.msrb.mxu0 %v2346_v39 }
 0x1ac   :  { %v908_v52 = vpop.f32.mrf.mxu2  ;;  %v812_v51 = vpop.f32.mrf.mxu0  ;;  %v1216_v59 = vrot.slane %v1215_v57, 4  ;;  %v1213_v21 = vrot.slane %v1212_v33, 1 }
 0x1ad   :  { %v957_v53 = vpop.f32.mrf.mxu3  ;;  %v861_v58 = vpop.f32.mrf.mxu1 }
 0x1ae   :  { %v862_v61 = vadd.f32 %v861_v58, %v812_v51  ;;  %v1217_v4 = vadd.f32 %v1216_v59, %v1215_v57  ;;  %v958_v9 = vadd.f32 %v957_v53, %v908_v52  ;;  %v1214_v35 = vadd.f32 %v1213_v21, %v1212_v33  ;;  %v2362_v51 = vld [vmem:[%s2713_s3] ss:$0 sm:$0xff] }
 0x1af   :  { %v1165_v57 = vadd.f32 %v1164_v13, %v1163_v8  ;;  %1723 = vmatpush.bf16.msrb.mxu0 %v2345_v1 }
 0x1b0   :  { %v1024_v63 = vmax.f32 %v862_v61, 0.0  ;;  %v1218_v18 = vrot.slane %v1217_v4, 2  ;;  %v1021_v22 = vmax.f32 %v958_v9, 0.0  ;;  %v1308_v56 = vsel %vm1292_vm5, %v1214_v35, %v1307_v14 }
 0x1b1   :  { %v1313_v47 = vsel %vm1288_vm3, %v1165_v57, %v2689_v50 }
 0x1b2   :  { %v1236_v5 = vadd.f32 %v1024_v63, %v1020_v62  ;;  %v1219_v31 = vadd.f32 %v1218_v18, %v1217_v4  ;;  %v1314_v58 = vsel %vm1290_vm4, %v1193_v44, %v1313_v47 }
 0x1b3   :  { %1724 = vmatpush.bf16.msrb.mxu0 %v2344_v2 }
 0x1b4   :  { %v910_v10 = vpop.f32.mrf.mxu2  ;;  %v1237_v12 = vrot.slane %v1236_v5, 4  ;;  %v1220_v37 = vrot.slane %v1219_v31, 1 }
 0x1b5   :  { %v959_v6 = vpop.f32.mrf.mxu3 }
 0x1b6   :  { %v960_v7 = vadd.f32 %v959_v6, %v910_v10  ;;  %v1238_v19 = vadd.f32 %v1237_v12, %v1236_v5  ;;  %v1221_v41 = vadd.f32 %v1220_v37, %v1219_v31  ;;  %v2363_v6 = vld [vmem:[%s2715_s5] ss:$0 sm:$0xff] }
 0x1b7   :  { %1725 = vmatpush.bf16.msrb.mxu0 %v2343_v3 }
 0x1b8   :  { %v1025_v32 = vmax.f32 %v960_v7, 0.0  ;;  %v1239_v23 = vrot.slane %v1238_v19, 2  ;;  %v1315_v59 = vsel %vm1292_vm5, %v1221_v41, %v1314_v58 }
 0x1ba   :  { %v1243_v28 = vadd.f32 %v1025_v32, %v1021_v22  ;;  %v1240_v34 = vadd.f32 %v1239_v23, %v1238_v19 }
 0x1bc   :  { %v1244_v36 = vrot.slane %v1243_v28, 4  ;;  %v1241_v26 = vrot.slane %v1240_v34, 1 }
 0x1be   :  { %v1245_v15 = vadd.f32 %v1244_v36, %v1243_v28  ;;  %v1242_v40 = vadd.f32 %v1241_v26, %v1240_v34 }
 0x1c0   :  { %v1246_v42 = vrot.slane %v1245_v15, 2  ;;  %v1605_v43 = vpop.f32.mrf.mxu0  ;;  %v1309_v52 = vsel %vm1294_vm6, %v1242_v40, %v1308_v56 }
 0x1c1   :  { %v1334_v53 = vpack.c.bf16 %v1309_v52, %v1309_v52  ;;  %v1606_v61 = vadd.f32 %v2362_v51, %v1605_v43 }
 0x1c2   :  { %v1247_v45 = vadd.f32 %v1246_v42, %v1245_v15 }
 0x1c3   :  { %1630 = vmatmul.bf16.vlgmr.msra.gmra.mxu2 %v1334_v53 }
 0x1c4   :  { %v1248_v54 = vrot.slane %v1247_v45, 1 }
 0x1c6   :  { %v1249_v48 = vadd.f32 %v1248_v54, %v1247_v45 }
 0x1c8   :  { %v1618_v20 = vpop.f32.mrf.mxu1  ;;  %v1316_v55 = vsel %vm1294_vm6, %v1249_v48, %v1315_v59  ;;  %v1607_v62 = vpop.f32.mrf.mxu0 }
 0x1c9   :  { %v1619_v60 = vadd.f32 %v1618_v20, %v1606_v61  ;;  %v1335_v63 = vpack.c.bf16 %v1316_v55, %v1316_v55 }
 0x1cb   :  { %1643 = vmatmul.bf16.vlgmr.msra.gmra.mxu3 %v1335_v63 }
 0x1d0   :  { %v1620_v0 = vpop.f32.mrf.mxu1 }
 0x246   :  { %v1631_v50 = vpop.f32.mrf.mxu2 }
 0x247   :  { %v1632_v4 = vadd.f32 %v1631_v50, %v1619_v60 }
 0x24e   :  { %v1644_v5 = vpop.f32.mrf.mxu3  ;;  %v1633_v9 = vpop.f32.mrf.mxu2 }
 0x24f   :  { %v1645_v33 = vadd.f32 %v1644_v5, %v1632_v4 }
 0x251   :  { %v1648_v10 = vmax.f32 %v1645_v33, 0.0 }
 0x253   :  { %v1649_v11 = vpack.c.bf16 %v1648_v10, %v1648_v10 }
 0x255   :  { %1726 = vmatmul.bf16.vlgmr.msrb.gmra.mxu0 %v1649_v11 }
 0x256   :  { %v1646_v12 = vpop.f32.mrf.mxu3 }
 0x2d2   :  { %v1727_v16 = vpop.f32.mrf.mxu0 }
 0x2d3   :  { %v1728_v17 = vadd.f32 %v2363_v6, %v1727_v16 }
 0x2d5   :  { %1731 = vst [vmem:[#allocation11] sm:$0xff] %v1728_v17 }
 0x2d6   :  { %1742 = dma.vmem_to_hbm [thread:$0]  %s1738_s23, 128, %s1740_s26, [#allocation5]  }
 0x2da   :  { %v1729_v7 = vpop.f32.mrf.mxu0 }
 0x2db   :  { %2490 = dma.done.wait [#allocation5], 128  }
 0x2dc   :  { %2491 = vsyncadd [#allocation5], 4294967168 }
 0x2dd   :  { %1747 = vsyncpa [#allocation4], 1 }
 0x2de   :  { %1748 = vsyncpa [#allocation7], 1 }
 0x2df   :  { %1749 = vsyncpa [#allocation10], 1 }
 0x2e0   :  { %1750 = vsyncpa [#allocation5], 1 }

</bundles_post_ra>
